<compile_context>
chip_gen: v6e
topology: v6e:2x2x1
jax: 0.10.0
libtpu: 0.0.40
codegen_flags: <defaults>
</compile_context>

<pallas_src>
import jax
import jax.numpy as jnp
from jax.experimental import pallas as pl
from jax.experimental.pallas import tpu as pltpu

# ---------------- scaled-down synthetic sizes ----------------
VOCAB = 50      # vocabulary_size (365553 in module, scaled down)
E = 32          # word_embedding_size (200 in module, scaled down)
H = 16          # hidden_size (150 in module, scaled down)
H2 = 2 * H      # bidirectional encoder width (per sequence)
WSH = 1 * H     # ws_factor * hidden_size
R = 10          # attention heads R (as in module)
B = 10          # batch size (must be a multiple of 5)
LQ = 8          # question length
LA = 8          # answer length
T = LQ          # fused recurrence length
NS = 4          # fused LSTM streams: q-fwd, q-bwd, a-fwd, a-bwd
HALL = NS * H   # 64  fused hidden width  [h_qf | h_qb | h_af | h_ab]
GALL = 4 * HALL  # 256 fused gate width (gate groups i | f | o | g)
N = T * B       # 80  flattened (time, batch) rows

assert LQ == LA, "fused recurrence assumes equal question/answer lengths"
# TODO(synk): MyLSTM's packed-sequence / padding-mask handling and dropout are
# not reproduced; all tokens are treated as valid (eval mode, no padding).


# ============================================================
# Fused kernel: one BiLSTM recurrence for q+a, batched attention/match, output
# (single invocation, no grid — all state lives in VMEM / registers)
# ============================================================
def _fused_kernel(xcat_ref, wih_ref, bih_ref, whh_ref, a1_ref, a2_ref, ao_ref,
                  out_ref, gx_ref):
    # ---- hoisted input projection: all 4 streams x 4 gates in ONE matmul ----
    # xcat rows already carry [q(t) | q(T-1-t) | a(t) | a(T-1-t)], so the
    # backward-direction time reversal costs nothing here (f32, off the chain).
    gx_ref[...] = (jnp.dot(xcat_ref[...], wih_ref[...],
                           preferred_element_type=jnp.float32)
                   + bih_ref[...])

    whh = whh_ref[...]                                      # (HALL, GALL) bf16
    h = jnp.zeros((B, HALL), jnp.float32)                   # [qf | qb | af | ab]
    c = jnp.zeros((B, HALL), jnp.float32)
    h_steps = []
    for t in range(T):                                      # fully unrolled serial chain
        gh = jnp.dot(h.astype(jnp.bfloat16), whh,
                     preferred_element_type=jnp.float32)    # (B, GALL)
        g = gx_ref[t * B:(t + 1) * B, :] + gh               # one full-width add
        sfo = jax.nn.sigmoid(g[:, 0:3 * HALL])              # i | f | o  (one wide EUP op)
        gg = jnp.tanh(g[:, 3 * HALL:4 * HALL])              # g
        c = sfo[:, HALL:2 * HALL] * c + sfo[:, 0:HALL] * gg
        h = sfo[:, 2 * HALL:3 * HALL] * jnp.tanh(c)
        h_steps.append(h)

    # ---- assemble encodings once (time-major rows: row = t*B + b) ----
    # position-t encoding: forward lanes from step t, backward lanes from step T-1-t
    lane = jax.lax.broadcasted_iota(jnp.int32, (B, HALL), 1)
    fwd_lane = (lane % H2) < H
    e2 = jnp.concatenate(
        [jnp.where(fwd_lane, h_steps[t], h_steps[T - 1 - t]) for t in range(T)],
        axis=0)                                             # (N, HALL) = [q_enc | a_enc]
    qe = e2[:, 0:H2]                                        # (N, 2H)
    ae = e2[:, H2:2 * H2]                                   # (N, 2H)

    # ---- fused q/a attention MLP + softmax over time (batched over B) ----
    w1 = a1_ref[0:HALL, :]
    b1 = a1_ref[HALL:HALL + 1, :]
    w2 = a2_ref[0:2 * WSH, :]
    b2 = a2_ref[2 * WSH:2 * WSH + 1, :]
    h1 = jnp.tanh(jnp.dot(e2, w1, preferred_element_type=jnp.float32) + b1)   # (N, 2*WSH)
    s = jnp.dot(h1, w2, preferred_element_type=jnp.float32) + b2              # (N, 2R)
    s = s - jnp.max(s, axis=0, keepdims=True)      # columnwise shift (softmax-invariant)
    ez = jnp.exp(s)
    rows = jax.lax.broadcasted_iota(jnp.int32, (N, B), 0)
    cols = jax.lax.broadcasted_iota(jnp.int32, (N, B), 1)
    sel = (rows % B == cols).astype(jnp.float32)   # row (t,b) belongs to batch b
    z = jax.lax.dot_general(sel, ez, (((0,), (0,)), ((), ())),
                            preferred_element_type=jnp.float32)               # (B, 2R)
    att = ez / jnp.dot(sel, z, preferred_element_type=jnp.float32)            # softmax over t
    qa = att[:, 0:R]                                                          # (N, R)
    aa = att[:, R:2 * R]                                                      # (N, R)

    # ---- match features: feat[b,r] = sum_t qa * (sum_s (qe.ae) * aa) ----
    gram = jax.lax.dot_general(qe, ae, (((1,), (1,)), ((), ())),
                               preferred_element_type=jnp.float32)            # (N, N)
    ri = jax.lax.broadcasted_iota(jnp.int32, (N, N), 0)
    ci = jax.lax.broadcasted_iota(jnp.int32, (N, N), 1)
    gram = jnp.where((ri % B) == (ci % B), gram, 0.0)        # same-batch pairs only
    p = jnp.dot(gram, aa, preferred_element_type=jnp.float32)                 # (N, R)
    feat = jax.lax.dot_general(sel, qa * p, (((0,), (0,)), ((), ())),
                               preferred_element_type=jnp.float32)            # (B, R)

    # ---- output linear ----
    wo = ao_ref[0:R, :]
    bo = ao_ref[R:R + 1, :]
    out_ref[...] = jnp.dot(feat, wo, preferred_element_type=jnp.float32) + bo  # (B, 1)


# ============================================================
# Wrapper: weight packing + single pallas_call
# ============================================================
_GATE_SRC = {"i": 0, "f": 1, "g": 2, "o": 3}   # column order inside per-direction params
_GATE_DST = ("i", "f", "o", "g")               # packed order: sigmoid gates contiguous, tanh last


def _pack_fused_lstm(q_lstm, a_lstm):
    """Pack the 4 LSTM streams (q-fwd, q-bwd, a-fwd, a-bwd) into fused weights."""
    streams = (q_lstm[0:3], q_lstm[3:6], a_lstm[0:3], a_lstm[3:6])
    wih = jnp.zeros((NS * E, GALL), jnp.float32)
    whh = jnp.zeros((HALL, GALL), jnp.float32)
    bias = jnp.zeros((1, GALL), jnp.float32)
    for s, (wih_s, whh_s, b_s) in enumerate(streams):
        for gdst, gname in enumerate(_GATE_DST):
            gsrc = _GATE_SRC[gname]
            src = slice(gsrc * H, (gsrc + 1) * H)
            dst = slice(gdst * HALL + s * H, gdst * HALL + (s + 1) * H)
            wih = wih.at[s * E:(s + 1) * E, dst].set(wih_s[:, src])
            whh = whh.at[s * H:(s + 1) * H, dst].set(whh_s[:, src])
            bias = bias.at[:, dst].set(b_s[:, src])
    return wih, whh, bias


def _pack_attention(q_attn, a_attn, out_p):
    """Block-diagonal packing of q/a attention MLPs + output linear (3 arrays)."""
    q_w1, q_b1, q_w2, q_b2 = q_attn
    a_w1, a_b1, a_w2, a_b2 = a_attn
    w1 = jnp.zeros((HALL, 2 * WSH), jnp.float32)
    w1 = w1.at[0:H2, 0:WSH].set(q_w1).at[H2:2 * H2, WSH:2 * WSH].set(a_w1)
    w2 = jnp.zeros((2 * WSH, 2 * R), jnp.float32)
    w2 = w2.at[0:WSH, 0:R].set(q_w2).at[WSH:2 * WSH, R:2 * R].set(a_w2)
    wo, bo = out_p
    a1 = jnp.concatenate([w1, jnp.concatenate([q_b1, a_b1], axis=-1)], axis=0)  # (HALL+1, 2*WSH)
    a2 = jnp.concatenate([w2, jnp.concatenate([q_b2, a_b2], axis=-1)], axis=0)  # (2*WSH+1, 2R)
    ao = jnp.concatenate([wo, bo], axis=0)                                      # (R+1, 1)
    return a1, a2, ao


def _vmem_spec():
    return pl.BlockSpec(memory_space=pltpu.MemorySpace.VMEM)


@jax.jit
def forward(questions, answers, logics, params):
    del logics  # unused in the original torch forward as well
    # fixed (word2vec) embedding + trainable delta embedding
    q_vec = params["fixed_emb"][questions] + params["delta_emb"][questions]  # (B, LQ, E)
    a_vec = params["fixed_emb"][answers] + params["delta_emb"][answers]      # (B, LA, E)

    # time-major (T, B, E); each fused-recurrence row carries the token every
    # stream needs at step t: [q(t) | q(T-1-t) | a(t) | a(T-1-t)], so the
    # backward-direction time reversal is handled for free in the wrapper.
    qx = jnp.transpose(q_vec, (1, 0, 2))
    ax = jnp.transpose(a_vec, (1, 0, 2))
    xcat = jnp.concatenate([qx, qx[::-1], ax, ax[::-1]], axis=-1)            # (T, B, 4E)
    xcat = xcat.reshape(T * B, NS * E)                                       # (80, 128)

    wih, whh, bih = _pack_fused_lstm(params["q_lstm"], params["a_lstm"])
    a1, a2, ao = _pack_attention(params["q_attn"], params["a_attn"], params["out"])

    # bf16 only for the serial-recurrence matmul operand (Whh); the hoisted
    # input projection stays f32 (off the critical path, keeps rounding small).
    args = (xcat, wih, bih, whh.astype(jnp.bfloat16), a1, a2, ao)

    out = pl.pallas_call(
        _fused_kernel,
        out_shape=jax.ShapeDtypeStruct((B, 1), jnp.float32),
        in_specs=[_vmem_spec() for _ in args],
        out_specs=_vmem_spec(),
        scratch_shapes=[
            pltpu.VMEM((N, GALL), jnp.float32),   # hoisted gate-x projections
        ],
        # Grid-less call (whole problem fits one TensorCore's VMEM easily).
        # At production sizes, add a batch grid axis with
        # dimension_semantics=("parallel",) to split across v7x's 2 TCs.
    )(*args)

    return out.reshape(B // 5, 5)


# ---------------- pure-JAX reference (for verification) ----------------
def _lstm_dir_ref(x_tbe, wih, whh, b, reverse):
    xs = x_tbe[::-1] if reverse else x_tbe

    def step(carry, xt):
        h, c = carry
        gates = xt @ wih + h @ whh + b[0]
        i, f, g, o = jnp.split(gates, 4, axis=-1)
        c = jax.nn.sigmoid(f) * c + jax.nn.sigmoid(i) * jnp.tanh(g)
        h = jax.nn.sigmoid(o) * jnp.tanh(c)
        return (h, c), h

    init = (jnp.zeros((B, H), jnp.float32), jnp.zeros((B, H), jnp.float32))
    _, hs = jax.lax.scan(step, init, xs)
    return hs[::-1] if reverse else hs


def forward_ref(questions, answers, params):
    q_vec = params["fixed_emb"][questions] + params["delta_emb"][questions]
    a_vec = params["fixed_emb"][answers] + params["delta_emb"][answers]

    def bilstm_ref(vec_ble, lp):
        wih_f, whh_f, b_f, wih_b, whh_b, b_b = lp
        x = jnp.transpose(vec_ble, (1, 0, 2))
        hf = _lstm_dir_ref(x, wih_f, whh_f, b_f, reverse=False)
        hb = _lstm_dir_ref(x, wih_b, whh_b, b_b, reverse=True)
        return jnp.transpose(jnp.concatenate([hf, hb], -1), (1, 0, 2))

    q_enc = bilstm_ref(q_vec, params["q_lstm"])
    a_enc = bilstm_ref(a_vec, params["a_lstm"])

    def attn_ref(enc, ap):
        w1, b1, w2, b2 = ap
        s = jnp.tanh(enc @ w1 + b1[0]) @ w2 + b2[0]
        return jax.nn.softmax(s, axis=1)

    qa = attn_ref(q_enc, params["q_attn"])
    aa = attn_ref(a_enc, params["a_attn"])
    qm = jnp.einsum("bld,blr->bdr", q_enc, qa)
    am = jnp.einsum("bld,blr->bdr", a_enc, aa)
    feat = jnp.sum(qm * am, axis=1)
    wo, bo = params["out"]
    return (feat @ wo + bo[0]).reshape(B // 5, 5)


# ---------------- deterministic parameter init ----------------
def init_params(key):
    ks = jax.random.split(key, 8)

    def w(k, shape, s=0.1):
        return jax.random.normal(k, shape, jnp.float32) * s

    def lstm_params(k):
        kk = jax.random.split(k, 6)
        return (w(kk[0], (E, 4 * H)), w(kk[1], (H, 4 * H)), w(kk[2], (1, 4 * H)),
                w(kk[3], (E, 4 * H)), w(kk[4], (H, 4 * H)), w(kk[5], (1, 4 * H)))

    def attn_params(k):
        kk = jax.random.split(k, 4)
        return (w(kk[0], (H2, WSH)), w(kk[1], (1, WSH)),
                w(kk[2], (WSH, R)), w(kk[3], (1, R)))

    return dict(
        fixed_emb=w(ks[0], (VOCAB, E), 0.5),
        delta_emb=jax.random.uniform(ks[1], (VOCAB, E), jnp.float32, -0.1, 0.1),
        q_lstm=lstm_params(ks[2]),
        a_lstm=lstm_params(ks[3]),
        q_attn=attn_params(ks[4]),
        a_attn=attn_params(ks[5]),
        out=(w(ks[6], (R, 1)), w(ks[7], (1, 1))),
    )


if __name__ == "__main__":
    key = jax.random.PRNGKey(0)
    kq, ka, kp = jax.random.split(key, 3)
    # token ids in [1, VOCAB) so the padding mask is trivially all-valid
    questions = jax.random.randint(kq, (B, LQ), 1, VOCAB, dtype=jnp.int32)
    answers = jax.random.randint(ka, (B, LA), 1, VOCAB, dtype=jnp.int32)
    logics = jnp.ones((B,), jnp.int32)  # unused by the forward pass
    params = init_params(kp)

    out = jax.block_until_ready(forward(questions, answers, logics, params))
    ref = forward_ref(questions, answers, params)

    assert out.shape == (B // 5, 5), out.shape
    assert bool(jnp.allclose(out, ref, atol=1e-2, rtol=1e-2)), (out, ref)
    print("KERNEL_OK")
</pallas_src>

<mosaic_0001>
module attributes {stable_mosaic.version = 11 : i64} {
  func.func @_fused_kernel(%arg0: memref<80x128xf32, #tpu.memory_space<vmem>>, %arg1: memref<128x256xf32, #tpu.memory_space<vmem>>, %arg2: memref<1x256xf32, #tpu.memory_space<vmem>>, %arg3: memref<64x256xbf16, #tpu.memory_space<vmem>>, %arg4: memref<65x32xf32, #tpu.memory_space<vmem>>, %arg5: memref<33x20xf32, #tpu.memory_space<vmem>>, %arg6: memref<11x1xf32, #tpu.memory_space<vmem>>, %arg7: memref<10x1xf32, #tpu.memory_space<vmem>>, %arg8: memref<80x256xf32, #tpu.memory_space<vmem>>) attributes {dimension_semantics = [], scalar_prefetch = 0 : i64, scratch_operands = 1 : i64, tpu.core_type = #tpu.core_type<tc>} {
    %c0 = arith.constant 0 : index
    %c0_0 = arith.constant 0 : index
    %0 = vector.load %arg0[%c0, %c0_0] : memref<80x128xf32, #tpu.memory_space<vmem>>, vector<80x128xf32>
    %c0_1 = arith.constant 0 : index
    %c0_2 = arith.constant 0 : index
    %1 = vector.load %arg1[%c0_1, %c0_2] : memref<128x256xf32, #tpu.memory_space<vmem>>, vector<128x256xf32>
    %cst = arith.constant dense<0.000000e+00> : vector<80x256xf32>
    %2 = tpu.matmul %0, %1, %cst {dimension_numbers = #tpu.dot_dimension_numbers<[1], [0], [0], [1], [0, 0, 1, 1], [], []>} : vector<80x128xf32>, vector<128x256xf32>, vector<80x256xf32> -> vector<80x256xf32>
    %c0_3 = arith.constant 0 : index
    %c0_4 = arith.constant 0 : index
    %3 = vector.load %arg2[%c0_3, %c0_4] : memref<1x256xf32, #tpu.memory_space<vmem>>, vector<1x256xf32>
    %4 = vector.broadcast %3 : vector<1x256xf32> to vector<80x256xf32>
    %5 = arith.addf %2, %4 : vector<80x256xf32>
    %c0_5 = arith.constant 0 : index
    %c0_6 = arith.constant 0 : index
    %6 = vector.load %arg8[%c0_5, %c0_6] : memref<80x256xf32, #tpu.memory_space<vmem>>, vector<80x256xf32>
    tpu.vector_store %arg8[%c0_5, %c0_6], %5 {strides = array<i32>} : memref<80x256xf32, #tpu.memory_space<vmem>>, vector<80x256xf32>,
    %c0_7 = arith.constant 0 : index
    %c0_8 = arith.constant 0 : index
    %7 = vector.load %arg3[%c0_7, %c0_8] : memref<64x256xbf16, #tpu.memory_space<vmem>>, vector<64x256xbf16>
    %cst_9 = arith.constant 0.000000e+00 : f32
    %8 = vector.broadcast %cst_9 : f32 to vector<10x64xf32>
    %cst_10 = arith.constant 0.000000e+00 : f32
    %9 = vector.broadcast %cst_10 : f32 to vector<10x64xf32>
    %10 = arith.truncf %8 : vector<10x64xf32> to vector<10x64xbf16>
    %cst_11 = arith.constant dense<0.000000e+00> : vector<10x256xf32>
    %11 = tpu.matmul %10, %7, %cst_11 {dimension_numbers = #tpu.dot_dimension_numbers<[1], [0], [0], [1], [0, 0, 1, 1], [], []>} : vector<10x64xbf16>, vector<64x256xbf16>, vector<10x256xf32> -> vector<10x256xf32>
    %c0_12 = arith.constant 0 : index
    %c0_13 = arith.constant 0 : index
    %12 = vector.load %arg8[%c0_12, %c0_13] : memref<80x256xf32, #tpu.memory_space<vmem>>, vector<10x256xf32>
    %13 = arith.addf %12, %11 : vector<10x256xf32>
    %14 = vector.extract_strided_slice %13 {offsets = [0, 0], sizes = [10, 192], strides = [1, 1]} : vector<10x256xf32> to vector<10x192xf32>
    %15 = arith.negf %14 : vector<10x192xf32>
    %16 = math.exp %15 : vector<10x192xf32>
    %cst_14 = arith.constant 1.000000e+00 : f32
    %17 = vector.broadcast %cst_14 : f32 to vector<10x192xf32>
    %18 = arith.addf %17, %16 : vector<10x192xf32>
    %19 = arith.divf %17, %18 : vector<10x192xf32>
    %20 = vector.extract_strided_slice %13 {offsets = [0, 192], sizes = [10, 64], strides = [1, 1]} : vector<10x256xf32> to vector<10x64xf32>
    %21 = math.tanh %20 : vector<10x64xf32>
    %22 = vector.extract_strided_slice %19 {offsets = [0, 64], sizes = [10, 64], strides = [1, 1]} : vector<10x192xf32> to vector<10x64xf32>
    %23 = arith.mulf %22, %9 : vector<10x64xf32>
    %24 = vector.extract_strided_slice %19 {offsets = [0, 0], sizes = [10, 64], strides = [1, 1]} : vector<10x192xf32> to vector<10x64xf32>
    %25 = arith.mulf %24, %21 : vector<10x64xf32>
    %26 = arith.addf %23, %25 : vector<10x64xf32>
    %27 = vector.extract_strided_slice %19 {offsets = [0, 128], sizes = [10, 64], strides = [1, 1]} : vector<10x192xf32> to vector<10x64xf32>
    %28 = math.tanh %26 : vector<10x64xf32>
    %29 = arith.mulf %27, %28 : vector<10x64xf32>
    %30 = arith.truncf %29 : vector<10x64xf32> to vector<10x64xbf16>
    %cst_15 = arith.constant dense<0.000000e+00> : vector<10x256xf32>
    %31 = tpu.matmul %30, %7, %cst_15 {dimension_numbers = #tpu.dot_dimension_numbers<[1], [0], [0], [1], [0, 0, 1, 1], [], []>} : vector<10x64xbf16>, vector<64x256xbf16>, vector<10x256xf32> -> vector<10x256xf32>
    %c10 = arith.constant 10 : index
    %c0_16 = arith.constant 0 : index
    %32 = vector.load %arg8[%c10, %c0_16] : memref<80x256xf32, #tpu.memory_space<vmem>>, vector<10x256xf32>
    %33 = arith.addf %32, %31 : vector<10x256xf32>
    %34 = vector.extract_strided_slice %33 {offsets = [0, 0], sizes = [10, 192], strides = [1, 1]} : vector<10x256xf32> to vector<10x192xf32>
    %35 = arith.negf %34 : vector<10x192xf32>
    %36 = math.exp %35 : vector<10x192xf32>
    %cst_17 = arith.constant 1.000000e+00 : f32
    %37 = vector.broadcast %cst_17 : f32 to vector<10x192xf32>
    %38 = arith.addf %37, %36 : vector<10x192xf32>
    %39 = arith.divf %37, %38 : vector<10x192xf32>
    %40 = vector.extract_strided_slice %33 {offsets = [0, 192], sizes = [10, 64], strides = [1, 1]} : vector<10x256xf32> to vector<10x64xf32>
    %41 = math.tanh %40 : vector<10x64xf32>
    %42 = vector.extract_strided_slice %39 {offsets = [0, 64], sizes = [10, 64], strides = [1, 1]} : vector<10x192xf32> to vector<10x64xf32>
    %43 = arith.mulf %42, %26 : vector<10x64xf32>
    %44 = vector.extract_strided_slice %39 {offsets = [0, 0], sizes = [10, 64], strides = [1, 1]} : vector<10x192xf32> to vector<10x64xf32>
    %45 = arith.mulf %44, %41 : vector<10x64xf32>
    %46 = arith.addf %43, %45 : vector<10x64xf32>
    %47 = vector.extract_strided_slice %39 {offsets = [0, 128], sizes = [10, 64], strides = [1, 1]} : vector<10x192xf32> to vector<10x64xf32>
    %48 = math.tanh %46 : vector<10x64xf32>
    %49 = arith.mulf %47, %48 : vector<10x64xf32>
    %50 = arith.truncf %49 : vector<10x64xf32> to vector<10x64xbf16>
    %cst_18 = arith.constant dense<0.000000e+00> : vector<10x256xf32>
    %51 = tpu.matmul %50, %7, %cst_18 {dimension_numbers = #tpu.dot_dimension_numbers<[1], [0], [0], [1], [0, 0, 1, 1], [], []>} : vector<10x64xbf16>, vector<64x256xbf16>, vector<10x256xf32> -> vector<10x256xf32>
    %c20 = arith.constant 20 : index
    %c0_19 = arith.constant 0 : index
    %52 = vector.load %arg8[%c20, %c0_19] : memref<80x256xf32, #tpu.memory_space<vmem>>, vector<10x256xf32>
    %53 = arith.addf %52, %51 : vector<10x256xf32>
    %54 = vector.extract_strided_slice %53 {offsets = [0, 0], sizes = [10, 192], strides = [1, 1]} : vector<10x256xf32> to vector<10x192xf32>
    %55 = arith.negf %54 : vector<10x192xf32>
    %56 = math.exp %55 : vector<10x192xf32>
    %cst_20 = arith.constant 1.000000e+00 : f32
    %57 = vector.broadcast %cst_20 : f32 to vector<10x192xf32>
    %58 = arith.addf %57, %56 : vector<10x192xf32>
    %59 = arith.divf %57, %58 : vector<10x192xf32>
    %60 = vector.extract_strided_slice %53 {offsets = [0, 192], sizes = [10, 64], strides = [1, 1]} : vector<10x256xf32> to vector<10x64xf32>
    %61 = math.tanh %60 : vector<10x64xf32>
    %62 = vector.extract_strided_slice %59 {offsets = [0, 64], sizes = [10, 64], strides = [1, 1]} : vector<10x192xf32> to vector<10x64xf32>
    %63 = arith.mulf %62, %46 : vector<10x64xf32>
    %64 = vector.extract_strided_slice %59 {offsets = [0, 0], sizes = [10, 64], strides = [1, 1]} : vector<10x192xf32> to vector<10x64xf32>
    %65 = arith.mulf %64, %61 : vector<10x64xf32>
    %66 = arith.addf %63, %65 : vector<10x64xf32>
    %67 = vector.extract_strided_slice %59 {offsets = [0, 128], sizes = [10, 64], strides = [1, 1]} : vector<10x192xf32> to vector<10x64xf32>
    %68 = math.tanh %66 : vector<10x64xf32>
    %69 = arith.mulf %67, %68 : vector<10x64xf32>
    %70 = arith.truncf %69 : vector<10x64xf32> to vector<10x64xbf16>
    %cst_21 = arith.constant dense<0.000000e+00> : vector<10x256xf32>
    %71 = tpu.matmul %70, %7, %cst_21 {dimension_numbers = #tpu.dot_dimension_numbers<[1], [0], [0], [1], [0, 0, 1, 1], [], []>} : vector<10x64xbf16>, vector<64x256xbf16>, vector<10x256xf32> -> vector<10x256xf32>
    %c30 = arith.constant 30 : index
    %c0_22 = arith.constant 0 : index
    %72 = vector.load %arg8[%c30, %c0_22] : memref<80x256xf32, #tpu.memory_space<vmem>>, vector<10x256xf32>
    %73 = arith.addf %72, %71 : vector<10x256xf32>
    %74 = vector.extract_strided_slice %73 {offsets = [0, 0], sizes = [10, 192], strides = [1, 1]} : vector<10x256xf32> to vector<10x192xf32>
    %75 = arith.negf %74 : vector<10x192xf32>
    %76 = math.exp %75 : vector<10x192xf32>
    %cst_23 = arith.constant 1.000000e+00 : f32
    %77 = vector.broadcast %cst_23 : f32 to vector<10x192xf32>
    %78 = arith.addf %77, %76 : vector<10x192xf32>
    %79 = arith.divf %77, %78 : vector<10x192xf32>
    %80 = vector.extract_strided_slice %73 {offsets = [0, 192], sizes = [10, 64], strides = [1, 1]} : vector<10x256xf32> to vector<10x64xf32>
    %81 = math.tanh %80 : vector<10x64xf32>
    %82 = vector.extract_strided_slice %79 {offsets = [0, 64], sizes = [10, 64], strides = [1, 1]} : vector<10x192xf32> to vector<10x64xf32>
    %83 = arith.mulf %82, %66 : vector<10x64xf32>
    %84 = vector.extract_strided_slice %79 {offsets = [0, 0], sizes = [10, 64], strides = [1, 1]} : vector<10x192xf32> to vector<10x64xf32>
    %85 = arith.mulf %84, %81 : vector<10x64xf32>
    %86 = arith.addf %83, %85 : vector<10x64xf32>
    %87 = vector.extract_strided_slice %79 {offsets = [0, 128], sizes = [10, 64], strides = [1, 1]} : vector<10x192xf32> to vector<10x64xf32>
    %88 = math.tanh %86 : vector<10x64xf32>
    %89 = arith.mulf %87, %88 : vector<10x64xf32>
    %90 = arith.truncf %89 : vector<10x64xf32> to vector<10x64xbf16>
    %cst_24 = arith.constant dense<0.000000e+00> : vector<10x256xf32>
    %91 = tpu.matmul %90, %7, %cst_24 {dimension_numbers = #tpu.dot_dimension_numbers<[1], [0], [0], [1], [0, 0, 1, 1], [], []>} : vector<10x64xbf16>, vector<64x256xbf16>, vector<10x256xf32> -> vector<10x256xf32>
    %c40 = arith.constant 40 : index
    %c0_25 = arith.constant 0 : index
    %92 = vector.load %arg8[%c40, %c0_25] : memref<80x256xf32, #tpu.memory_space<vmem>>, vector<10x256xf32>
    %93 = arith.addf %92, %91 : vector<10x256xf32>
    %94 = vector.extract_strided_slice %93 {offsets = [0, 0], sizes = [10, 192], strides = [1, 1]} : vector<10x256xf32> to vector<10x192xf32>
    %95 = arith.negf %94 : vector<10x192xf32>
    %96 = math.exp %95 : vector<10x192xf32>
    %cst_26 = arith.constant 1.000000e+00 : f32
    %97 = vector.broadcast %cst_26 : f32 to vector<10x192xf32>
    %98 = arith.addf %97, %96 : vector<10x192xf32>
    %99 = arith.divf %97, %98 : vector<10x192xf32>
    %100 = vector.extract_strided_slice %93 {offsets = [0, 192], sizes = [10, 64], strides = [1, 1]} : vector<10x256xf32> to vector<10x64xf32>
    %101 = math.tanh %100 : vector<10x64xf32>
    %102 = vector.extract_strided_slice %99 {offsets = [0, 64], sizes = [10, 64], strides = [1, 1]} : vector<10x192xf32> to vector<10x64xf32>
    %103 = arith.mulf %102, %86 : vector<10x64xf32>
    %104 = vector.extract_strided_slice %99 {offsets = [0, 0], sizes = [10, 64], strides = [1, 1]} : vector<10x192xf32> to vector<10x64xf32>
    %105 = arith.mulf %104, %101 : vector<10x64xf32>
    %106 = arith.addf %103, %105 : vector<10x64xf32>
    %107 = vector.extract_strided_slice %99 {offsets = [0, 128], sizes = [10, 64], strides = [1, 1]} : vector<10x192xf32> to vector<10x64xf32>
    %108 = math.tanh %106 : vector<10x64xf32>
    %109 = arith.mulf %107, %108 : vector<10x64xf32>
    %110 = arith.truncf %109 : vector<10x64xf32> to vector<10x64xbf16>
    %cst_27 = arith.constant dense<0.000000e+00> : vector<10x256xf32>
    %111 = tpu.matmul %110, %7, %cst_27 {dimension_numbers = #tpu.dot_dimension_numbers<[1], [0], [0], [1], [0, 0, 1, 1], [], []>} : vector<10x64xbf16>, vector<64x256xbf16>, vector<10x256xf32> -> vector<10x256xf32>
    %c50 = arith.constant 50 : index
    %c0_28 = arith.constant 0 : index
    %112 = vector.load %arg8[%c50, %c0_28] : memref<80x256xf32, #tpu.memory_space<vmem>>, vector<10x256xf32>
    %113 = arith.addf %112, %111 : vector<10x256xf32>
    %114 = vector.extract_strided_slice %113 {offsets = [0, 0], sizes = [10, 192], strides = [1, 1]} : vector<10x256xf32> to vector<10x192xf32>
    %115 = arith.negf %114 : vector<10x192xf32>
    %116 = math.exp %115 : vector<10x192xf32>
    %cst_29 = arith.constant 1.000000e+00 : f32
    %117 = vector.broadcast %cst_29 : f32 to vector<10x192xf32>
    %118 = arith.addf %117, %116 : vector<10x192xf32>
    %119 = arith.divf %117, %118 : vector<10x192xf32>
    %120 = vector.extract_strided_slice %113 {offsets = [0, 192], sizes = [10, 64], strides = [1, 1]} : vector<10x256xf32> to vector<10x64xf32>
    %121 = math.tanh %120 : vector<10x64xf32>
    %122 = vector.extract_strided_slice %119 {offsets = [0, 64], sizes = [10, 64], strides = [1, 1]} : vector<10x192xf32> to vector<10x64xf32>
    %123 = arith.mulf %122, %106 : vector<10x64xf32>
    %124 = vector.extract_strided_slice %119 {offsets = [0, 0], sizes = [10, 64], strides = [1, 1]} : vector<10x192xf32> to vector<10x64xf32>
    %125 = arith.mulf %124, %121 : vector<10x64xf32>
    %126 = arith.addf %123, %125 : vector<10x64xf32>
    %127 = vector.extract_strided_slice %119 {offsets = [0, 128], sizes = [10, 64], strides = [1, 1]} : vector<10x192xf32> to vector<10x64xf32>
    %128 = math.tanh %126 : vector<10x64xf32>
    %129 = arith.mulf %127, %128 : vector<10x64xf32>
    %130 = arith.truncf %129 : vector<10x64xf32> to vector<10x64xbf16>
    %cst_30 = arith.constant dense<0.000000e+00> : vector<10x256xf32>
    %131 = tpu.matmul %130, %7, %cst_30 {dimension_numbers = #tpu.dot_dimension_numbers<[1], [0], [0], [1], [0, 0, 1, 1], [], []>} : vector<10x64xbf16>, vector<64x256xbf16>, vector<10x256xf32> -> vector<10x256xf32>
    %c60 = arith.constant 60 : index
    %c0_31 = arith.constant 0 : index
    %132 = vector.load %arg8[%c60, %c0_31] : memref<80x256xf32, #tpu.memory_space<vmem>>, vector<10x256xf32>
    %133 = arith.addf %132, %131 : vector<10x256xf32>
    %134 = vector.extract_strided_slice %133 {offsets = [0, 0], sizes = [10, 192], strides = [1, 1]} : vector<10x256xf32> to vector<10x192xf32>
    %135 = arith.negf %134 : vector<10x192xf32>
    %136 = math.exp %135 : vector<10x192xf32>
    %cst_32 = arith.constant 1.000000e+00 : f32
    %137 = vector.broadcast %cst_32 : f32 to vector<10x192xf32>
    %138 = arith.addf %137, %136 : vector<10x192xf32>
    %139 = arith.divf %137, %138 : vector<10x192xf32>
    %140 = vector.extract_strided_slice %133 {offsets = [0, 192], sizes = [10, 64], strides = [1, 1]} : vector<10x256xf32> to vector<10x64xf32>
    %141 = math.tanh %140 : vector<10x64xf32>
    %142 = vector.extract_strided_slice %139 {offsets = [0, 64], sizes = [10, 64], strides = [1, 1]} : vector<10x192xf32> to vector<10x64xf32>
    %143 = arith.mulf %142, %126 : vector<10x64xf32>
    %144 = vector.extract_strided_slice %139 {offsets = [0, 0], sizes = [10, 64], strides = [1, 1]} : vector<10x192xf32> to vector<10x64xf32>
    %145 = arith.mulf %144, %141 : vector<10x64xf32>
    %146 = arith.addf %143, %145 : vector<10x64xf32>
    %147 = vector.extract_strided_slice %139 {offsets = [0, 128], sizes = [10, 64], strides = [1, 1]} : vector<10x192xf32> to vector<10x64xf32>
    %148 = math.tanh %146 : vector<10x64xf32>
    %149 = arith.mulf %147, %148 : vector<10x64xf32>
    %150 = arith.truncf %149 : vector<10x64xf32> to vector<10x64xbf16>
    %cst_33 = arith.constant dense<0.000000e+00> : vector<10x256xf32>
    %151 = tpu.matmul %150, %7, %cst_33 {dimension_numbers = #tpu.dot_dimension_numbers<[1], [0], [0], [1], [0, 0, 1, 1], [], []>} : vector<10x64xbf16>, vector<64x256xbf16>, vector<10x256xf32> -> vector<10x256xf32>
    %c70 = arith.constant 70 : index
    %c0_34 = arith.constant 0 : index
    %152 = vector.load %arg8[%c70, %c0_34] : memref<80x256xf32, #tpu.memory_space<vmem>>, vector<10x256xf32>
    %153 = arith.addf %152, %151 : vector<10x256xf32>
    %154 = vector.extract_strided_slice %153 {offsets = [0, 0], sizes = [10, 192], strides = [1, 1]} : vector<10x256xf32> to vector<10x192xf32>
    %155 = arith.negf %154 : vector<10x192xf32>
    %156 = math.exp %155 : vector<10x192xf32>
    %cst_35 = arith.constant 1.000000e+00 : f32
    %157 = vector.broadcast %cst_35 : f32 to vector<10x192xf32>
    %158 = arith.addf %157, %156 : vector<10x192xf32>
    %159 = arith.divf %157, %158 : vector<10x192xf32>
    %160 = vector.extract_strided_slice %153 {offsets = [0, 192], sizes = [10, 64], strides = [1, 1]} : vector<10x256xf32> to vector<10x64xf32>
    %161 = math.tanh %160 : vector<10x64xf32>
    %162 = vector.extract_strided_slice %159 {offsets = [0, 64], sizes = [10, 64], strides = [1, 1]} : vector<10x192xf32> to vector<10x64xf32>
    %163 = arith.mulf %162, %146 : vector<10x64xf32>
    %164 = vector.extract_strided_slice %159 {offsets = [0, 0], sizes = [10, 64], strides = [1, 1]} : vector<10x192xf32> to vector<10x64xf32>
    %165 = arith.mulf %164, %161 : vector<10x64xf32>
    %166 = arith.addf %163, %165 : vector<10x64xf32>
    %167 = vector.extract_strided_slice %159 {offsets = [0, 128], sizes = [10, 64], strides = [1, 1]} : vector<10x192xf32> to vector<10x64xf32>
    %168 = math.tanh %166 : vector<10x64xf32>
    %169 = arith.mulf %167, %168 : vector<10x64xf32>
    %170 = tpu.iota {dimensions = array<i32: 1>} : vector<10x64xi32>
    %c32_i32 = arith.constant 32 : i32
    %c0_i32 = arith.constant 0 : i32
    %171 = arith.cmpi eq, %c32_i32, %c0_i32 : i32
    %c1_i32 = arith.constant 1 : i32
    %172 = arith.select %171, %c1_i32, %c32_i32 : i32
    %173 = vector.broadcast %172 : i32 to vector<10x64xi32>
    %174 = arith.remsi %170, %173 : vector<10x64xi32>
    %c0_i32_36 = arith.constant 0 : i32
    %175 = vector.broadcast %c0_i32_36 : i32 to vector<10x64xi32>
    %176 = arith.cmpi ne, %174, %175 : vector<10x64xi32>
    %c0_i32_37 = arith.constant 0 : i32
    %177 = vector.broadcast %c0_i32_37 : i32 to vector<10x64xi32>
    %178 = arith.cmpi slt, %174, %177 : vector<10x64xi32>
    %c0_i32_38 = arith.constant 0 : i32
    %179 = arith.cmpi slt, %172, %c0_i32_38 : i32
    %180 = vector.broadcast %179 : i1 to vector<10x64xi1>
    %181 = vector.broadcast %180 : vector<10x64xi1> to vector<10x64xi1>
    %182 = arith.xori %178, %181 : vector<10x64xi1>
    %183 = arith.andi %182, %176 : vector<10x64xi1>
    %184 = vector.broadcast %172 : i32 to vector<10x64xi32>
    %185 = arith.addi %174, %184 : vector<10x64xi32>
    %186 = arith.select %183, %185, %174 : vector<10x64xi1>, vector<10x64xi32>
    %c16_i32 = arith.constant 16 : i32
    %187 = vector.broadcast %c16_i32 : i32 to vector<10x64xi32>
    %188 = arith.cmpi slt, %186, %187 : vector<10x64xi32>
    %189 = arith.select %188, %29, %169 : vector<10x64xi1>, vector<10x64xf32>
    %190 = arith.select %188, %49, %149 : vector<10x64xi1>, vector<10x64xf32>
    %191 = arith.select %188, %69, %129 : vector<10x64xi1>, vector<10x64xf32>
    %192 = arith.select %188, %89, %109 : vector<10x64xi1>, vector<10x64xf32>
    %193 = arith.select %188, %109, %89 : vector<10x64xi1>, vector<10x64xf32>
    %194 = arith.select %188, %129, %69 : vector<10x64xi1>, vector<10x64xf32>
    %195 = arith.select %188, %149, %49 : vector<10x64xi1>, vector<10x64xf32>
    %196 = arith.select %188, %169, %29 : vector<10x64xi1>, vector<10x64xf32>
    %197 = tpu.concatenate %189, %190, %191, %192, %193, %194, %195, %196 in 0 : vector<10x64xf32>, vector<10x64xf32>, vector<10x64xf32>, vector<10x64xf32>, vector<10x64xf32>, vector<10x64xf32>, vector<10x64xf32>, vector<10x64xf32> -> vector<80x64xf32>
    %198 = vector.extract_strided_slice %197 {offsets = [0, 0], sizes = [80, 32], strides = [1, 1]} : vector<80x64xf32> to vector<80x32xf32>
    %199 = vector.extract_strided_slice %197 {offsets = [0, 32], sizes = [80, 32], strides = [1, 1]} : vector<80x64xf32> to vector<80x32xf32>
    %c0_39 = arith.constant 0 : index
    %c0_40 = arith.constant 0 : index
    %200 = vector.load %arg4[%c0_39, %c0_40] : memref<65x32xf32, #tpu.memory_space<vmem>>, vector<64x32xf32>
    %c64 = arith.constant 64 : index
    %c0_41 = arith.constant 0 : index
    %201 = vector.load %arg4[%c64, %c0_41] : memref<65x32xf32, #tpu.memory_space<vmem>>, vector<1x32xf32>
    %c0_42 = arith.constant 0 : index
    %c0_43 = arith.constant 0 : index
    %202 = vector.load %arg5[%c0_42, %c0_43] : memref<33x20xf32, #tpu.memory_space<vmem>>, vector<32x20xf32>
    %c32 = arith.constant 32 : index
    %c0_44 = arith.constant 0 : index
    %203 = vector.load %arg5[%c32, %c0_44] : memref<33x20xf32, #tpu.memory_space<vmem>>, vector<1x20xf32>
    %cst_45 = arith.constant dense<0.000000e+00> : vector<80x32xf32>
    %204 = tpu.matmul %197, %200, %cst_45 {dimension_numbers = #tpu.dot_dimension_numbers<[1], [0], [0], [1], [0, 0, 1, 1], [], []>} : vector<80x64xf32>, vector<64x32xf32>, vector<80x32xf32> -> vector<80x32xf32>
    %205 = vector.broadcast %201 : vector<1x32xf32> to vector<80x32xf32>
    %206 = arith.addf %204, %205 : vector<80x32xf32>
    %207 = math.tanh %206 : vector<80x32xf32>
    %cst_46 = arith.constant dense<0.000000e+00> : vector<80x20xf32>
    %208 = tpu.matmul %207, %202, %cst_46 {dimension_numbers = #tpu.dot_dimension_numbers<[1], [0], [0], [1], [0, 0, 1, 1], [], []>} : vector<80x32xf32>, vector<32x20xf32>, vector<80x20xf32> -> vector<80x20xf32>
    %209 = vector.broadcast %203 : vector<1x20xf32> to vector<80x20xf32>
    %210 = arith.addf %208, %209 : vector<80x20xf32>
    %cst_47 = arith.constant dense<0xFF800000> : vector<20xf32>
    %211 = vector.multi_reduction <maximumf>, %210, %cst_47 [0] : vector<80x20xf32> to vector<20xf32>
    %212 = vector.shape_cast %211 : vector<20xf32> to vector<1x20xf32>
    %213 = vector.broadcast %212 : vector<1x20xf32> to vector<80x20xf32>
    %214 = arith.subf %210, %213 : vector<80x20xf32>
    %215 = math.exp %214 : vector<80x20xf32>
    %216 = tpu.iota {dimensions = array<i32: 0>} : vector<80x10xi32>
    %217 = tpu.iota {dimensions = array<i32: 1>} : vector<80x10xi32>
    %c10_i32 = arith.constant 10 : i32
    %c0_i32_48 = arith.constant 0 : i32
    %218 = arith.cmpi eq, %c10_i32, %c0_i32_48 : i32
    %c1_i32_49 = arith.constant 1 : i32
    %219 = arith.select %218, %c1_i32_49, %c10_i32 : i32
    %220 = vector.broadcast %219 : i32 to vector<80x10xi32>
    %221 = arith.remsi %216, %220 : vector<80x10xi32>
    %c0_i32_50 = arith.constant 0 : i32
    %222 = vector.broadcast %c0_i32_50 : i32 to vector<80x10xi32>
    %223 = arith.cmpi ne, %221, %222 : vector<80x10xi32>
    %c0_i32_51 = arith.constant 0 : i32
    %224 = vector.broadcast %c0_i32_51 : i32 to vector<80x10xi32>
    %225 = arith.cmpi slt, %221, %224 : vector<80x10xi32>
    %c0_i32_52 = arith.constant 0 : i32
    %226 = arith.cmpi slt, %219, %c0_i32_52 : i32
    %227 = vector.broadcast %226 : i1 to vector<80x10xi1>
    %228 = vector.broadcast %227 : vector<80x10xi1> to vector<80x10xi1>
    %229 = arith.xori %225, %228 : vector<80x10xi1>
    %230 = arith.andi %229, %223 : vector<80x10xi1>
    %231 = vector.broadcast %219 : i32 to vector<80x10xi32>
    %232 = arith.addi %221, %231 : vector<80x10xi32>
    %233 = arith.select %230, %232, %221 : vector<80x10xi1>, vector<80x10xi32>
    %234 = arith.cmpi eq, %233, %217 : vector<80x10xi32>
    %235 = arith.extui %234 : vector<80x10xi1> to vector<80x10xi32>
    %236 = arith.sitofp %235 : vector<80x10xi32> to vector<80x10xf32>
    %cst_53 = arith.constant dense<0.000000e+00> : vector<10x20xf32>
    %237 = tpu.matmul %236, %215, %cst_53 {dimension_numbers = #tpu.dot_dimension_numbers<[0], [0], [1], [1], [0, 1, 1, 1], [], []>} : vector<80x10xf32>, vector<80x20xf32>, vector<10x20xf32> -> vector<10x20xf32>
    %cst_54 = arith.constant dense<0.000000e+00> : vector<80x20xf32>
    %238 = tpu.matmul %236, %237, %cst_54 {dimension_numbers = #tpu.dot_dimension_numbers<[1], [0], [0], [1], [0, 0, 1, 1], [], []>} : vector<80x10xf32>, vector<10x20xf32>, vector<80x20xf32> -> vector<80x20xf32>
    %239 = arith.divf %215, %238 : vector<80x20xf32>
    %240 = vector.extract_strided_slice %239 {offsets = [0, 0], sizes = [80, 10], strides = [1, 1]} : vector<80x20xf32> to vector<80x10xf32>
    %241 = vector.extract_strided_slice %239 {offsets = [0, 10], sizes = [80, 10], strides = [1, 1]} : vector<80x20xf32> to vector<80x10xf32>
    %cst_55 = arith.constant dense<0.000000e+00> : vector<80x80xf32>
    %242 = tpu.matmul %198, %199, %cst_55 {dimension_numbers = #tpu.dot_dimension_numbers<[1], [1], [0], [0], [0, 0, 1, 0], [], []>} : vector<80x32xf32>, vector<80x32xf32>, vector<80x80xf32> -> vector<80x80xf32>
    %243 = tpu.iota {dimensions = array<i32: 0>} : vector<80x80xi32>
    %244 = tpu.iota {dimensions = array<i32: 1>} : vector<80x80xi32>
    %c10_i32_56 = arith.constant 10 : i32
    %c0_i32_57 = arith.constant 0 : i32
    %245 = arith.cmpi eq, %c10_i32_56, %c0_i32_57 : i32
    %c1_i32_58 = arith.constant 1 : i32
    %246 = arith.select %245, %c1_i32_58, %c10_i32_56 : i32
    %247 = vector.broadcast %246 : i32 to vector<80x80xi32>
    %248 = arith.remsi %243, %247 : vector<80x80xi32>
    %c0_i32_59 = arith.constant 0 : i32
    %249 = vector.broadcast %c0_i32_59 : i32 to vector<80x80xi32>
    %250 = arith.cmpi ne, %248, %249 : vector<80x80xi32>
    %c0_i32_60 = arith.constant 0 : i32
    %251 = vector.broadcast %c0_i32_60 : i32 to vector<80x80xi32>
    %252 = arith.cmpi slt, %248, %251 : vector<80x80xi32>
    %c0_i32_61 = arith.constant 0 : i32
    %253 = arith.cmpi slt, %246, %c0_i32_61 : i32
    %254 = vector.broadcast %253 : i1 to vector<80x80xi1>
    %255 = vector.broadcast %254 : vector<80x80xi1> to vector<80x80xi1>
    %256 = arith.xori %252, %255 : vector<80x80xi1>
    %257 = arith.andi %256, %250 : vector<80x80xi1>
    %258 = vector.broadcast %246 : i32 to vector<80x80xi32>
    %259 = arith.addi %248, %258 : vector<80x80xi32>
    %260 = arith.select %257, %259, %248 : vector<80x80xi1>, vector<80x80xi32>
    %c10_i32_62 = arith.constant 10 : i32
    %c0_i32_63 = arith.constant 0 : i32
    %261 = arith.cmpi eq, %c10_i32_62, %c0_i32_63 : i32
    %c1_i32_64 = arith.constant 1 : i32
    %262 = arith.select %261, %c1_i32_64, %c10_i32_62 : i32
    %263 = vector.broadcast %262 : i32 to vector<80x80xi32>
    %264 = arith.remsi %244, %263 : vector<80x80xi32>
    %c0_i32_65 = arith.constant 0 : i32
    %265 = vector.broadcast %c0_i32_65 : i32 to vector<80x80xi32>
    %266 = arith.cmpi ne, %264, %265 : vector<80x80xi32>
    %c0_i32_66 = arith.constant 0 : i32
    %267 = vector.broadcast %c0_i32_66 : i32 to vector<80x80xi32>
    %268 = arith.cmpi slt, %264, %267 : vector<80x80xi32>
    %c0_i32_67 = arith.constant 0 : i32
    %269 = arith.cmpi slt, %262, %c0_i32_67 : i32
    %270 = vector.broadcast %269 : i1 to vector<80x80xi1>
    %271 = vector.broadcast %270 : vector<80x80xi1> to vector<80x80xi1>
    %272 = arith.xori %268, %271 : vector<80x80xi1>
    %273 = arith.andi %272, %266 : vector<80x80xi1>
    %274 = vector.broadcast %262 : i32 to vector<80x80xi32>
    %275 = arith.addi %264, %274 : vector<80x80xi32>
    %276 = arith.select %273, %275, %264 : vector<80x80xi1>, vector<80x80xi32>
    %277 = arith.cmpi eq, %260, %276 : vector<80x80xi32>
    %cst_68 = arith.constant 0.000000e+00 : f32
    %278 = vector.broadcast %cst_68 : f32 to vector<80x80xf32>
    %279 = arith.select %277, %242, %278 : vector<80x80xi1>, vector<80x80xf32>
    %cst_69 = arith.constant dense<0.000000e+00> : vector<80x10xf32>
    %280 = tpu.matmul %279, %241, %cst_69 {dimension_numbers = #tpu.dot_dimension_numbers<[1], [0], [0], [1], [0, 0, 1, 1], [], []>} : vector<80x80xf32>, vector<80x10xf32>, vector<80x10xf32> -> vector<80x10xf32>
    %281 = arith.mulf %240, %280 : vector<80x10xf32>
    %cst_70 = arith.constant dense<0.000000e+00> : vector<10x10xf32>
    %282 = tpu.matmul %236, %281, %cst_70 {dimension_numbers = #tpu.dot_dimension_numbers<[0], [0], [1], [1], [0, 1, 1, 1], [], []>} : vector<80x10xf32>, vector<80x10xf32>, vector<10x10xf32> -> vector<10x10xf32>
    %c0_71 = arith.constant 0 : index
    %c0_72 = arith.constant 0 : index
    %283 = vector.load %arg6[%c0_71, %c0_72] : memref<11x1xf32, #tpu.memory_space<vmem>>, vector<10x1xf32>
    %c10_73 = arith.constant 10 : index
    %c0_74 = arith.constant 0 : index
    %284 = vector.load %arg6[%c10_73, %c0_74] : memref<11x1xf32, #tpu.memory_space<vmem>>, vector<1x1xf32>
    %cst_75 = arith.constant dense<0.000000e+00> : vector<10x1xf32>
    %285 = tpu.matmul %282, %283, %cst_75 {dimension_numbers = #tpu.dot_dimension_numbers<[1], [0], [0], [1], [0, 0, 1, 1], [], []>} : vector<10x10xf32>, vector<10x1xf32>, vector<10x1xf32> -> vector<10x1xf32>
    %286 = vector.broadcast %284 : vector<1x1xf32> to vector<10x1xf32>
    %287 = arith.addf %285, %286 : vector<10x1xf32>
    %c0_76 = arith.constant 0 : index
    %c0_77 = arith.constant 0 : index
    %288 = vector.load %arg7[%c0_76, %c0_77] : memref<10x1xf32, #tpu.memory_space<vmem>>, vector<10x1xf32>
    tpu.vector_store %arg7[%c0_76, %c0_77], %287 {strides = array<i32>} : memref<10x1xf32, #tpu.memory_space<vmem>>, vector<10x1xf32>,
    return
  }
}

</mosaic_0001>

<bundles_post_ra>
// kernel: forward.1
= control target key start
LH: loop header
LB: loop body
LE: loop exit
PB: predicated region body
PF: predicated region fallthrough
CT: control target
= control target key end

     0   :  { %v3610_v3 = vmov 0.0   ;;  %v3611_v4 = vmov 0   ;;  %v71_v44 = vlaneseq  ;;  %vm444_vm0 = vcmask 1041408   ;;  %s4794_s1 = inlined_call_operand.vmem [shape: f32[128,256], index: 1, kind: input, shape index: {}]   ;;  %s4795_s3 = inlined_call_operand.vmem [shape: bf16[64,256], index: 3, kind: input, shape index: {}]   ;;  %s4796_s0 = inlined_call_operand.vmem [shape: f32[80,128], index: 0, kind: input, shape index: {}]   ;;  %s4797_s2 = inlined_call_operand.vmem [shape: f32[1,256], index: 2, kind: input, shape index: {}]   ;;  %s4798_s4 = inlined_call_operand.vmem [shape: f32[65,32], index: 4, kind: input, shape index: {}]   ;;  %s4799_s5 = inlined_call_operand.vmem [shape: f32[33,20], index: 5, kind: input, shape index: {}]   ;;  %s4800_s6 = inlined_call_operand.vmem [shape: f32[11,1], index: 6, kind: input, shape index: {}]   ;;  %s4801_s7 = inlined_call_operand.vmem [shape: f32[10,1], index: 7, kind: output, shape index: {}]  }
   0x1   :  { %v68_v0 = vld [vmem:[%s4794_s1 + $0xf8] sm:$0xff]  ;;  %v67_v1 = vld [vmem:[%s4794_s1 + $0xf0] sm:$0xff]  ;;  %v66_v2 = vld [vmem:[%s4794_s1 + $0xe8] sm:$0xff]  ;;  %145 = vmatprep.mubr.f32.mxu0 %v3610_v3  ;;  %310 = vmatprep.mubr.bf16.mxu1 %v3611_v4  ;;  %vm274_vm1 = vcmask 523264   ;;  %vm583_vm2 = vcmask 1043456   ;;  %vm722_vm3 = vcmask 1045504  }
   0x2   :  { %81 = vmatprep.subr.mxu0 %v68_v0  ;;  %v65_v5 = vld [vmem:[%s4794_s1 + $0xe0] sm:$0xff]  ;;  %v64_v6 = vld [vmem:[%s4794_s1 + $0xd8] sm:$0xff]  ;;  %v63_v7 = vld [vmem:[%s4794_s1 + $0xd0] sm:$0xff]  ;;  %v3830_v45 = vshrl.u32 %v71_v44, 7  ;;  %vm1610_vm5 = vcmask 261120  }
   0x3   :  { %82 = vmatpush1.msra.mxu0 %v67_v1  ;;  %v62_v8 = vld [vmem:[%s4794_s1 + $0xc8] sm:$0xff]  ;;  %v61_v9 = vld [vmem:[%s4794_s1 + $0xc0] sm:$0xff]  ;;  %v60_v10 = vld [vmem:[%s4794_s1 + $0xb8] sm:$0xff] }
   0x4   :  { %83 = vmatprep.subr.mxu0 %v66_v2  ;;  %v59_v11 = vld [vmem:[%s4794_s1 + $0xb0] sm:$0xff]  ;;  %v58_v13 = vld [vmem:[%s4794_s1 + $0xa8] sm:$0xff]  ;;  %v57_v15 = vld [vmem:[%s4794_s1 + $0xa0] sm:$0xff]  ;;  %v73_v46 = vsub.s32 0, %v3830_v45  ;;  %v77_v48 = vsub.s32 1, %v3830_v45 }
   0x5   :  { %84 = vmatpush1.msra.mxu0 %v65_v5  ;;  %v3690_v12 = vld [vmem:[%s4795_s3 + $0x34] ss:$8 sps:$4 sm:$0xff]   ;;  %v3698_v14 = vld [vmem:[%s4795_s3 + $0x30] ss:$8 sps:$4 sm:$0xff]   ;;  %v3711_v17 = vld [vmem:[%s4795_s3 + $0x24] ss:$8 sps:$4 sm:$0xff]  }
   0x6   :  { %85 = vmatprep.subr.mxu0 %v64_v6  ;;  %286 = vmatprep.subr.bf16.mxu1 %v3690_v12  ;;  %v56_v16 = vld [vmem:[%s4794_s1 + $0x98] sm:$0xff]  ;;  %v55_v18 = vld [vmem:[%s4794_s1 + $0x90] sm:$0xff]  ;;  %v3719_v19 = vld [vmem:[%s4795_s3 + $0x20] ss:$8 sps:$4 sm:$0xff]  }
   0x7   :  { %86 = vmatpush1.msra.mxu0 %v63_v7  ;;  %287 = vmatpush1.bf16.msra.mxu1 %v3698_v14  ;;  %v54_v20 = vld [vmem:[%s4794_s1 + $0x88] sm:$0xff]  ;;  %v53_v21 = vld [vmem:[%s4794_s1 + $0x80] sm:$0xff]  ;;  %v3731_v22 = vld [vmem:[%s4795_s3 + $0x14] ss:$8 sps:$4 sm:$0xff]  }
   0x8   :  { %87 = vmatprep.subr.mxu0 %v62_v8  ;;  %288 = vmatprep.subr.bf16.mxu1 %v3711_v17  ;;  %v52_v23 = vld [vmem:[%s4794_s1 + $0x78] sm:$0xff]  ;;  %v51_v24 = vld [vmem:[%s4794_s1 + $0x70] sm:$0xff]  ;;  %v3749_v26 = vld [vmem:[%s4795_s3 + $0x4] ss:$8 sps:$4 sm:$0xff]  }
   0x9   :  { %88 = vmatpush1.msra.mxu0 %v61_v9  ;;  %v3743_v25 = vld [vmem:[%s4795_s3 + $0x10] ss:$8 sps:$4 sm:$0xff]   ;;  %v50_v27 = vld [vmem:[%s4794_s1 + $0x68] sm:$0xff]  ;;  %v49_v28 = vld [vmem:[%s4794_s1 + $0x60] sm:$0xff] }
   0xa   :  { %89 = vmatprep.subr.mxu0 %v60_v10  ;;  %v48_v29 = vld [vmem:[%s4794_s1 + $0x58] sm:$0xff]  ;;  %v3764_v30 = vld [vmem:[%s4795_s3] ss:$8 sps:$4 sm:$0xff]   ;;  %v47_v31 = vld [vmem:[%s4794_s1 + $0x50] sm:$0xff] }
   0xb   :  { %90 = vmatpush1.msra.mxu0 %v59_v11  ;;  %289 = vmatpush1.bf16.msra.mxu1 %v3719_v19  ;;  %v46_v32 = vld [vmem:[%s4794_s1 + $0x48] sm:$0xff]  ;;  %v45_v33 = vld [vmem:[%s4794_s1 + $0x40] sm:$0xff]  ;;  %v44_v34 = vld [vmem:[%s4794_s1 + $0x38] sm:$0xff] }
   0xc   :  { %91 = vmatprep.subr.mxu0 %v58_v13  ;;  %290 = vmatprep.subr.bf16.mxu1 %v3731_v22  ;;  %v43_v35 = vld [vmem:[%s4794_s1 + $0x30] sm:$0xff]  ;;  %v42_v36 = vld [vmem:[%s4794_s1 + $0x28] sm:$0xff]  ;;  %v41_v37 = vld [vmem:[%s4794_s1 + $0x20] sm:$0xff] }
   0xd   :  { %92 = vmatpush1.msra.mxu0 %v57_v15  ;;  %v40_v38 = vld [vmem:[%s4794_s1 + $0x18] sm:$0xff]  ;;  %v39_v39 = vld [vmem:[%s4794_s1 + $0x10] sm:$0xff]  ;;  %v38_v40 = vld [vmem:[%s4794_s1 + $0x8] sm:$0xff] }
   0xe   :  { %93 = vmatprep.subr.mxu0 %v56_v16  ;;  %v37_v41 = vld [vmem:[%s4794_s1] sm:$0xff]  ;;  %v28_v43 = vld [vmem:[%s4796_s0 + $0x8] sm:$0xff] }
   0xf   :  { %94 = vmatpush1.msra.mxu0 %v55_v18  ;;  %291 = vmatpush1.bf16.msra.mxu1 %v3743_v25  ;;  %v27_v42 = vld [vmem:[%s4796_s0] sm:$0xff] }
  0x10   :  { %95 = vmatprep.subr.mxu0 %v54_v20  ;;  %292 = vmatprep.subr.bf16.mxu1 %v3749_v26  ;;  %v69_v47 = vld [vmem:[%s4797_s2] sm:$0x3]  ;;  %s3612_s2 = smov 64  }
  0x11   :  { %96 = vmatpush1.msra.mxu0 %v53_v21  ;;  %v3837_v49 = vrot.slane %v69_v47, %v73_v46  ;;  %v3839_v51 = vrot.slane %v69_v47, %v77_v48 }
  0x12   :  { %97 = vmatprep.subr.mxu0 %v52_v23 }
  0x13   :  { %98 = vmatpush1.msra.mxu0 %v51_v24  ;;  %293 = vmatpush1.bf16.msra.mxu1 %v3764_v30 }
  0x14   :  { %99 = vmatprep.subr.mxu0 %v50_v27  ;;  %401 = vmatprep.subr.bf16.mxu1 %v3690_v12 }
  0x15   :  { %100 = vmatpush1.msra.mxu0 %v49_v28 }
  0x16   :  { %101 = vmatprep.subr.mxu0 %v48_v29  ;;  %311 = vmatmul.mubr.bf16.vlgmr.msra.gmra.mxu1 %v3611_v4 }
  0x17   :  { %102 = vmatpush1.msra.mxu0 %v47_v31  ;;  %402 = vmatpush1.bf16.msra.mxu1 %v3698_v14 }
  0x18   :  { %103 = vmatprep.subr.mxu0 %v46_v32  ;;  %403 = vmatprep.subr.bf16.mxu1 %v3711_v17  ;;  %v29_v32 = vld [vmem:[%s4796_s0 + $0x10] sm:$0xff] }
  0x19   :  { %104 = vmatpush1.msra.mxu0 %v45_v33  ;;  %425 = vmatprep.mubr.bf16.mxu1 %v3611_v4 }
  0x1a   :  { %105 = vmatprep.subr.mxu0 %v44_v34 }
  0x1b   :  { %106 = vmatpush1.msra.mxu0 %v43_v35  ;;  %404 = vmatpush1.bf16.msra.mxu1 %v3719_v19 }
  0x1c   :  { %107 = vmatprep.subr.mxu0 %v42_v36  ;;  %405 = vmatprep.subr.bf16.mxu1 %v3731_v22 }
  0x1d   :  { %108 = vmatpush1.msra.mxu0 %v41_v37 }
  0x1e   :  { %109 = vmatprep.subr.mxu0 %v40_v38 }
  0x1f   :  { %110 = vmatpush1.msra.mxu0 %v39_v39  ;;  %406 = vmatpush1.bf16.msra.mxu1 %v3743_v25 }
  0x20   :  { %111 = vmatprep.subr.mxu0 %v38_v40  ;;  %407 = vmatprep.subr.bf16.mxu1 %v3749_v26 }
  0x21   :  { %112 = vmatpush1.msra.mxu0 %v37_v41 }
  0x22   :  { %146 = vmatmul.mubr.f32.vlgmr.msra.gmra.mxu0 %v27_v42  ;;  %818 = vmatprep.subr.bf16.mxu0 %v3690_v12 }
  0x23   :  { %151 = vmatprep.mubr.f32.mxu0 %v3610_v3  ;;  %819 = vmatpush1.bf16.msra.mxu0 %v3698_v14 }
  0x24   :  { %820 = vmatprep.subr.bf16.mxu0 %v3711_v17  ;;  %408 = vmatpush1.bf16.msra.mxu1 %v3764_v30 }
  0x25   :  { %540 = vmatprep.subr.bf16.mxu1 %v3690_v12 }
  0x26   :  { %152 = vmatmul.mubr.f32.gmra.mxu0 %v28_v43 }
  0x27   :  { %157 = vmatprep.mubr.f32.mxu0 %v3610_v3  ;;  %821 = vmatpush1.bf16.msra.mxu0 %v3719_v19 }
  0x28   :  { %822 = vmatprep.subr.bf16.mxu0 %v3731_v22 }
  0x2a   :  { %158 = vmatmul.mubr.f32.gmra.mxu0 %v29_v32 }
  0x2b   :  { %823 = vmatpush1.bf16.msra.mxu0 %v3743_v25  ;;  %163 = vmatprep.mubr.f32.mxu0 %v3610_v3 }
  0x2c   :  { %824 = vmatprep.subr.bf16.mxu0 %v3749_v26 }
  0x2f   :  { %825 = vmatpush1.bf16.msra.mxu0 %v3764_v30 }
  0x30   :  { %1078 = vmatprep.subr.bf16.mxu0 %v3690_v12 }
  0xd6   :  { %v312_v50 = vpop.f32.mrf.mxu1 }
  0xd8   :  { %v314_v55 = vpop.f32.mrf.mxu1 }
  0xda   :  { %v316_v63 = vpop.f32.mrf.mxu1 }
  0xdc   :  { %v318_v0 = vpop.f32.mrf.mxu1 }
  0xe2   :  { %v147_v52 = vpop.f32.mrf.mxu0 }
  0xe3   :  { %v148_v53 = vadd.f32 %v147_v52, %v3837_v49 }
  0xe4   :  { %v149_v54 = vpop.f32.mrf.mxu0 }
  0xe5   :  { %v150_v56 = vadd.f32 %v149_v54, %v3839_v51  ;;  %v325_v57 = vadd.f32 %v312_v50, %v148_v53 }
  0xe6   :  { %v153_v58 = vpop.f32.mrf.mxu0 }
  0xe7   :  { %v154_v59 = vadd.f32 %v153_v58, %v3837_v49  ;;  %v326_v60 = vadd.f32 %v314_v55, %v150_v56  ;;  %v2884_v7 = vmul.f32 -1.442695, %v325_v57 }
  0xe8   :  { %v155_v61 = vpop.f32.mrf.mxu0 }
  0xe9   :  { %208 = vst [vmem:[#allocation2 + $0x50] sm:$0xff] %v154_v59  ;;  %v156_v62 = vadd.f32 %v155_v61, %v3839_v51  ;;  %3351 = vtanh.f32 %v326_v60  ;;  %v2885_v41 = vmul.f32 -1.442695, %v326_v60 }
  0xea   :  { %v159_v58 = vpop.f32.mrf.mxu0 }
  0xeb   :  { %209 = vst [vmem:[#allocation2 + $0x18] sm:$0xff] %v156_v62  ;;  %v160_v59 = vadd.f32 %v159_v58, %v3837_v49 }
  0xec   :  { %v161_v60 = vpop.f32.mrf.mxu0 }
  0xed   :  { %210 = vst [vmem:[#allocation2 + $0x30] sm:$0xff] %v160_v59  ;;  %v162_v61 = vadd.f32 %v161_v60, %v3839_v51 }
  0xef   :  { %211 = vst [vmem:[#allocation2 + $0x68] sm:$0xff] %v162_v61 }
  0xf0   :  { %v323_v8 = vld [vmem:[#allocation2 + $0x50] sm:$0x3] }
  0xf1   :  { %v327_v9 = vadd.f32 %v323_v8, %v316_v63 }
  0xf2   :  { %v324_v1 = vld [vmem:[#allocation2 + $0x18] sm:$0x3] }
  0xf3   :  { %v328_v2 = vadd.f32 %v324_v1, %v318_v0  ;;  %v2886_v10 = vmul.f32 -1.442695, %v327_v9  ;;  %v437_v1 = vld [vmem:[#allocation2 + $0x18] sm:$0xfc] }
  0xf5   :  { %3353 = vtanh.f32 %v328_v2  ;;  %v2887_v42 = vmul.f32 -1.442695, %v328_v2 }
  0xf6   :  { %v3352_v5 = vpop.eup %3351  ;;  %3355 = vpow2.f32 %v2884_v7 }
  0xf7   :  { %359 = vrot.lane.b32.xlu0 %v3352_v5, %s3612_s2  ;;  %3357 = vpow2.f32 %v2886_v10 }
 0x102   :  { %v3354_v6 = vpop.eup %3353 }
 0x103   :  { %361 = vrot.lane.b32.xlu0 %v3354_v6, %s3612_s2  ;;  %v3356_v11 = vpop.eup %3355 }
 0x104   :  { %v341_v13 = vadd.f32 1.0, %v3356_v11  ;;  %v3358_v15 = vpop.eup %3357  ;;  %v439_v11 = vld [vmem:[#allocation2 + $0x68] sm:$0xf] }
 0x105   :  { %v343_v16 = vadd.f32 1.0, %v3358_v15 }
 0x106   :  { %3359 = vrcp.f32 %v341_v13 }
 0x107   :  { %3361 = vrcp.f32 %v343_v16 }
 0x113   :  { %v3360_v18 = vpop.eup %3359 }
 0x114   :  { %v3362_v23 = vpop.eup %3361  ;;  %v355_v28 = vmul.f32 0.0, %v3360_v18 }
 0x115   :  { %v356_v33 = vmul.f32 0.0, %v3362_v23 }
 0x169   :  { %v360_v20 = vpop.permute.xlu0 %359 }
 0x16a   :  { %v365_v21 = vmul.f32 %v3360_v18, %v360_v20  ;;  %v436_v20 = vld [vmem:[#allocation2 + $0x50] sm:$0xfc] }
 0x16c   :  { %369 = vrot.lane.b32.xlu1 %v365_v21, %s3612_s2 }
 0x175   :  { %v362_v24 = vpop.permute.xlu0 %361 }
 0x176   :  { %v366_v27 = vmul.f32 %v3362_v23, %v362_v24  ;;  %v438_v23 = vld [vmem:[#allocation2 + $0x30] sm:$0xf] }
 0x178   :  { %371 = vrot.lane.b32.xlu1 %v366_v27, %s3612_s2 }
 0x1de   :  { %v370_v29 = vpop.permute.xlu1 %369 }
 0x1df   :  { %v3849_v31 = vadd.f32 %v370_v29, %v355_v28 }
 0x1e1   :  { %3363 = vtanh.f32 %v3849_v31  ;;  %v487_v36 = vrot.slane %v3849_v31, 6 }
 0x1ea   :  { %v372_v34 = vpop.permute.xlu1 %371 }
 0x1eb   :  { %v376_v35 = vadd.f32 %v372_v34, %v356_v33 }
 0x1ed   :  { %3365 = vtanh.f32 %v376_v35  ;;  %v488_v37 = vrot.slane %v376_v35, 6 }
 0x1ee   :  { %v3364_v38 = vpop.eup %3363  ;;  %3367 = vpow2.f32 %v2885_v41 }
 0x1ef   :  { %381 = vrot.lane.b32.xlu0 %v3364_v38, %s3612_s2  ;;  %v3861_v39 = vsel %vm444_vm0, %v487_v36, %v488_v37  ;;  %3369 = vpow2.f32 %v2887_v42 }
 0x1fa   :  { %v3366_v40 = vpop.eup %3365 }
 0x1fb   :  { %383 = vrot.lane.b32.xlu1 %v3366_v40, %s3612_s2  ;;  %v3368_v43 = vpop.eup %3367 }
 0x1fc   :  { %v3370_v46 = vpop.eup %3369  ;;  %v342_v47 = vadd.f32 1.0, %v3368_v43 }
 0x1fd   :  { %v344_v48 = vadd.f32 1.0, %v3370_v46 }
 0x1fe   :  { %3371 = vrcp.f32 %v342_v47 }
 0x1ff   :  { %3373 = vrcp.f32 %v344_v48 }
 0x20b   :  { %v3372_v52 = vpop.eup %3371 }
 0x20c   :  { %v3374_v53 = vpop.eup %3373 }
 0x261   :  { %v382_v50 = vpop.permute.xlu0 %381 }
 0x262   :  { %v3864_v55 = vmul.f32 %v3372_v52, %v382_v50 }
 0x26d   :  { %v384_v54 = vpop.permute.xlu1 %383 }
 0x26e   :  { %v3866_v56 = vmul.f32 %v3374_v53, %v384_v54 }
 0x270   :  { %v389_v57 = vpack.c.bf16 %v3866_v56, %v3864_v55 }
 0x272   :  { %2888 = vmatmul.mubr.msk.bf16.vlgmr.msra.gmra.mxu1 %vm274_vm1, %v389_v57  ;;  %v30_v57 = vld [vmem:[%s4796_s0 + $0x18] sm:$0xff] }
 0x273   :  { %541 = vmatpush1.bf16.msra.mxu1 %v3698_v14  ;;  %564 = vmatprep.mubr.bf16.mxu1 %v3611_v4 }
 0x274   :  { %542 = vmatprep.subr.bf16.mxu1 %v3711_v17  ;;  %164 = vmatmul.mubr.f32.gmra.mxu0 %v30_v57 }
 0x275   :  { %169 = vmatprep.mubr.f32.mxu0 %v3610_v3 }
 0x277   :  { %543 = vmatpush1.bf16.msra.mxu1 %v3719_v19 }
 0x278   :  { %544 = vmatprep.subr.bf16.mxu1 %v3731_v22 }
 0x27b   :  { %545 = vmatpush1.bf16.msra.mxu1 %v3743_v25 }
 0x27c   :  { %546 = vmatprep.subr.bf16.mxu1 %v3749_v26 }
 0x27f   :  { %547 = vmatpush1.bf16.msra.mxu1 %v3764_v30 }
 0x280   :  { %679 = vmatprep.subr.bf16.mxu1 %v3690_v12 }
 0x332   :  { %v427_v62 = vpop.f32.mrf.mxu1 }
 0x333   :  { %v445_v5 = vrot.slane %v427_v62, 6 }
 0x334   :  { %v429_v63 = vpop.f32.mrf.mxu1 }
 0x335   :  { %v446_v0 = vrot.slane %v429_v63, 6  ;;  %v455_v21 = vadd.f32 %v445_v5, %v436_v20 }
 0x336   :  { %v431_v2 = vpop.f32.mrf.mxu1 }
 0x337   :  { %v456_v6 = vadd.f32 %v446_v0, %v437_v1  ;;  %v447_v7 = vrot.slane %v431_v2, 6  ;;  %v2889_v24 = vmul.f32 -1.442695, %v455_v21  ;;  %v576_v21 = vld [vmem:[#allocation2 + $0x68] sm:$0xf0] }
 0x338   :  { %v433_v8 = vpop.f32.mrf.mxu1 }
 0x339   :  { %v448_v9 = vsel %vm444_vm0, %v445_v5, %v447_v7  ;;  %v449_v10 = vrot.slane %v433_v8, 6  ;;  %3375 = vtanh.f32 %v456_v6  ;;  %v2890_v58 = vmul.f32 -1.442695, %v456_v6 }
 0x33a   :  { %v457_v27 = vadd.f32 %v448_v9, %v438_v23 }
 0x33b   :  { %v450_v13 = vsel %vm444_vm0, %v446_v0, %v449_v10  ;;  %v165_v10 = vpop.f32.mrf.mxu0 }
 0x33c   :  { %v458_v15 = vadd.f32 %v450_v13, %v439_v11  ;;  %v2891_v28 = vmul.f32 -1.442695, %v457_v27  ;;  %v166_v11 = vadd.f32 %v165_v10, %v3837_v49 }
 0x33d   :  { %v167_v13 = vpop.f32.mrf.mxu0 }
 0x33e   :  { %3377 = vtanh.f32 %v458_v15  ;;  %v2892_v59 = vmul.f32 -1.442695, %v458_v15  ;;  %212 = vst [vmem:[#allocation2 + $0x78] sm:$0xff] %v166_v11  ;;  %v168_v15 = vadd.f32 %v167_v13, %v3839_v51 }
 0x33f   :  { %3379 = vpow2.f32 %v2889_v24 }
 0x340   :  { %3381 = vpow2.f32 %v2891_v28  ;;  %213 = vst [vmem:[#allocation2 + $0x80] sm:$0xff] %v168_v15 }
 0x346   :  { %v3376_v16 = vpop.eup %3375 }
 0x347   :  { %496 = vrot.lane.b32.xlu0 %v3376_v16, %s3612_s2 }
 0x34b   :  { %v3378_v18 = vpop.eup %3377 }
 0x34c   :  { %498 = vrot.lane.b32.xlu1 %v3378_v18, %s3612_s2  ;;  %v3380_v29 = vpop.eup %3379 }
 0x34d   :  { %v471_v32 = vadd.f32 1.0, %v3380_v29  ;;  %v3382_v33 = vpop.eup %3381 }
 0x34e   :  { %v473_v34 = vadd.f32 1.0, %v3382_v33 }
 0x34f   :  { %3383 = vrcp.f32 %v471_v32 }
 0x350   :  { %3385 = vrcp.f32 %v473_v34  ;;  %v578_v34 = vld [vmem:[#allocation2 + $0x80] sm:$0x3f] }
 0x35c   :  { %v3384_v35 = vpop.eup %3383 }
 0x35d   :  { %v3386_v40 = vpop.eup %3385  ;;  %v492_v43 = vmul.f32 %v3384_v35, %v487_v36 }
 0x35e   :  { %v493_v48 = vmul.f32 %v3386_v40, %v3861_v39 }
 0x3b9   :  { %v497_v37 = vpop.permute.xlu0 %496 }
 0x3ba   :  { %v502_v38 = vmul.f32 %v3384_v35, %v497_v37 }
 0x3bc   :  { %506 = vrot.lane.b32.xlu0 %v502_v38, %s3612_s2 }
 0x3be   :  { %v499_v41 = vpop.permute.xlu1 %498 }
 0x3bf   :  { %v503_v42 = vmul.f32 %v3386_v40, %v499_v41  ;;  %v575_v41 = vld [vmem:[#allocation2 + $0x30] sm:$0xf0] }
 0x3c1   :  { %508 = vrot.lane.b32.xlu1 %v503_v42, %s3612_s2 }
 0x42e   :  { %v507_v46 = vpop.permute.xlu0 %506 }
 0x42f   :  { %v3890_v47 = vadd.f32 %v507_v46, %v492_v43  ;;  %v577_v43 = vld [vmem:[#allocation2 + $0x78] sm:$0x3f] }
 0x431   :  { %3387 = vtanh.f32 %v3890_v47  ;;  %v626_v53 = vrot.slane %v3890_v47, 6  ;;  %v31_v47 = vld [vmem:[%s4796_s0 + $0x20] sm:$0xff] }
 0x432   :  { %170 = vmatmul.mubr.f32.gmra.mxu0 %v31_v47 }
 0x433   :  { %v509_v50 = vpop.permute.xlu1 %508  ;;  %175 = vmatprep.mubr.f32.mxu0 %v3610_v3 }
 0x434   :  { %v513_v52 = vadd.f32 %v509_v50, %v493_v48 }
 0x436   :  { %3389 = vtanh.f32 %v513_v52  ;;  %v627_v54 = vrot.slane %v513_v52, 6 }
 0x437   :  { %3391 = vpow2.f32 %v2890_v58 }
 0x438   :  { %v3901_v31 = vsel %vm444_vm0, %v626_v53, %v627_v54  ;;  %3393 = vpow2.f32 %v2892_v59 }
 0x43e   :  { %v3388_v36 = vpop.eup %3387 }
 0x43f   :  { %518 = vrot.lane.b32.xlu0 %v3388_v36, %s3612_s2 }
 0x443   :  { %v3390_v39 = vpop.eup %3389 }
 0x444   :  { %520 = vrot.lane.b32.xlu1 %v3390_v39, %s3612_s2  ;;  %v3392_v60 = vpop.eup %3391 }
 0x445   :  { %v3394_v61 = vpop.eup %3393  ;;  %v472_v62 = vadd.f32 1.0, %v3392_v60 }
 0x446   :  { %v474_v63 = vadd.f32 1.0, %v3394_v61 }
 0x447   :  { %3395 = vrcp.f32 %v472_v62 }
 0x448   :  { %3397 = vrcp.f32 %v474_v63 }
 0x454   :  { %v3396_v1 = vpop.eup %3395 }
 0x455   :  { %v3398_v2 = vpop.eup %3397 }
 0x4b1   :  { %v519_v0 = vpop.permute.xlu0 %518 }
 0x4b2   :  { %v3906_v7 = vmul.f32 %v3396_v1, %v519_v0 }
 0x4b6   :  { %v521_v5 = vpop.permute.xlu1 %520 }
 0x4b7   :  { %v3908_v8 = vmul.f32 %v3398_v2, %v521_v5 }
 0x4b9   :  { %v526_v6 = vpack.c.bf16 %v3908_v8, %v3906_v7 }
 0x4bb   :  { %v528_v9 = vrot.slane %v526_v6, 1 }
 0x4bd   :  { %2893 = vmatmul.mubr.msk.bf16.vlgmr.msra.gmra.mxu1 %vm274_vm1, %v528_v9 }
 0x4be   :  { %680 = vmatpush1.bf16.msra.mxu1 %v3698_v14  ;;  %703 = vmatprep.mubr.bf16.mxu1 %v3611_v4 }
 0x4bf   :  { %681 = vmatprep.subr.bf16.mxu1 %v3711_v17 }
 0x4c2   :  { %682 = vmatpush1.bf16.msra.mxu1 %v3719_v19 }
 0x4c3   :  { %683 = vmatprep.subr.bf16.mxu1 %v3731_v22 }
 0x4c6   :  { %684 = vmatpush1.bf16.msra.mxu1 %v3743_v25 }
 0x4c7   :  { %685 = vmatprep.subr.bf16.mxu1 %v3749_v26 }
 0x4ca   :  { %686 = vmatpush1.bf16.msra.mxu1 %v3764_v30 }
 0x4cb   :  { %940 = vmatprep.subr.bf16.mxu1 %v3690_v12 }
 0x57d   :  { %v566_v16 = vpop.f32.mrf.mxu1 }
 0x57e   :  { %v584_v24 = vrot.slane %v566_v16, 4 }
 0x57f   :  { %v568_v18 = vpop.f32.mrf.mxu1 }
 0x580   :  { %v585_v20 = vrot.slane %v568_v18, 4  ;;  %v594_v42 = vadd.f32 %v584_v24, %v575_v41 }
 0x581   :  { %v570_v23 = vpop.f32.mrf.mxu1 }
 0x582   :  { %v595_v27 = vadd.f32 %v585_v20, %v576_v21  ;;  %v586_v28 = vrot.slane %v570_v23, 4  ;;  %v2894_v46 = vmul.f32 -1.442695, %v594_v42 }
 0x583   :  { %v572_v29 = vpop.f32.mrf.mxu1 }
 0x584   :  { %v587_v32 = vsel %vm583_vm2, %v584_v24, %v586_v28  ;;  %v588_v33 = vrot.slane %v572_v29, 4  ;;  %3399 = vtanh.f32 %v595_v27  ;;  %v2895_v13 = vmul.f32 -1.442695, %v595_v27 }
 0x585   :  { %v596_v48 = vadd.f32 %v587_v32, %v577_v43 }
 0x586   :  { %v589_v35 = vsel %vm583_vm2, %v585_v20, %v588_v33 }
 0x587   :  { %v597_v37 = vadd.f32 %v589_v35, %v578_v34  ;;  %v2896_v50 = vmul.f32 -1.442695, %v596_v48  ;;  %v171_v35 = vpop.f32.mrf.mxu0 }
 0x589   :  { %3401 = vtanh.f32 %v597_v37  ;;  %v2897_v15 = vmul.f32 -1.442695, %v597_v37  ;;  %v172_v37 = vadd.f32 %v171_v35, %v3837_v49 }
 0x58a   :  { %3403 = vpow2.f32 %v2894_v46  ;;  %v715_v46 = vld [vmem:[#allocation2 + $0x80] sm:$0xc0] }
 0x58b   :  { %3405 = vpow2.f32 %v2896_v50 }
 0x591   :  { %v3400_v38 = vpop.eup %3399 }
 0x592   :  { %635 = vrot.lane.b32.xlu0 %v3400_v38, %s3612_s2  ;;  %v173_v38 = vpop.f32.mrf.mxu0 }
 0x596   :  { %v3402_v40 = vpop.eup %3401 }
 0x597   :  { %637 = vrot.lane.b32.xlu1 %v3402_v40, %s3612_s2  ;;  %v3404_v52 = vpop.eup %3403  ;;  %v174_v40 = vadd.f32 %v173_v38, %v3839_v51 }
 0x598   :  { %v610_v54 = vadd.f32 1.0, %v3404_v52  ;;  %v3406_v57 = vpop.eup %3405 }
 0x599   :  { %v612_v36 = vadd.f32 1.0, %v3406_v57 }
 0x59a   :  { %3407 = vrcp.f32 %v610_v54 }
 0x59b   :  { %3409 = vrcp.f32 %v612_v36 }
 0x5a7   :  { %v3408_v39 = vpop.eup %3407 }
 0x5a8   :  { %v3410_v60 = vpop.eup %3409  ;;  %v631_v63 = vmul.f32 %v3408_v39, %v626_v53 }
 0x5a9   :  { %v632_v2 = vmul.f32 %v3410_v60, %v3901_v31 }
 0x604   :  { %v636_v58 = vpop.permute.xlu0 %635 }
 0x605   :  { %v641_v59 = vmul.f32 %v3408_v39, %v636_v58 }
 0x607   :  { %645 = vrot.lane.b32.xlu0 %v641_v59, %s3612_s2 }
 0x609   :  { %v638_v61 = vpop.permute.xlu1 %637 }
 0x60a   :  { %v642_v62 = vmul.f32 %v3410_v60, %v638_v61  ;;  %v714_v61 = vld [vmem:[#allocation2 + $0x78] sm:$0xc0] }
 0x60c   :  { %647 = vrot.lane.b32.xlu1 %v642_v62, %s3612_s2 }
 0x679   :  { %v646_v0 = vpop.permute.xlu0 %645 }
 0x67a   :  { %v3932_v1 = vadd.f32 %v646_v0, %v631_v63 }
 0x67c   :  { %3411 = vtanh.f32 %v3932_v1  ;;  %v765_v9 = vrot.slane %v3932_v1, 6 }
 0x67e   :  { %v648_v5 = vpop.permute.xlu1 %647 }
 0x67f   :  { %v652_v6 = vadd.f32 %v648_v5, %v632_v2 }
 0x681   :  { %3413 = vtanh.f32 %v652_v6  ;;  %v766_v10 = vrot.slane %v652_v6, 6 }
 0x682   :  { %3415 = vpow2.f32 %v2895_v13 }
 0x683   :  { %v3940_v11 = vsel %vm444_vm0, %v765_v9, %v766_v10  ;;  %3417 = vpow2.f32 %v2897_v15 }
 0x689   :  { %v3412_v53 = vpop.eup %3411 }
 0x68a   :  { %657 = vrot.lane.b32.xlu0 %v3412_v53, %s3612_s2 }
 0x68e   :  { %v3414_v31 = vpop.eup %3413 }
 0x68f   :  { %659 = vrot.lane.b32.xlu1 %v3414_v31, %s3612_s2  ;;  %v3416_v16 = vpop.eup %3415 }
 0x690   :  { %v3418_v18 = vpop.eup %3417  ;;  %v611_v20 = vadd.f32 1.0, %v3416_v16 }
 0x691   :  { %v613_v21 = vadd.f32 1.0, %v3418_v18 }
 0x692   :  { %3419 = vrcp.f32 %v611_v20  ;;  %v32_v20 = vld [vmem:[%s4796_s0 + $0x28] sm:$0xff] }
 0x693   :  { %3421 = vrcp.f32 %v613_v21  ;;  %176 = vmatmul.mubr.f32.gmra.mxu0 %v32_v20  ;;  %v33_v21 = vld [vmem:[%s4796_s0 + $0x30] sm:$0xff] }
 0x694   :  { %181 = vmatprep.mubr.f32.mxu0 %v3610_v3 }
 0x697   :  { %182 = vmatmul.mubr.f32.gmra.mxu0 %v33_v21 }
 0x698   :  { %187 = vmatprep.mubr.f32.mxu0 %v3610_v3 }
 0x69f   :  { %v3420_v24 = vpop.eup %3419 }
 0x6a0   :  { %v3422_v28 = vpop.eup %3421 }
 0x6fc   :  { %v658_v23 = vpop.permute.xlu0 %657 }
 0x6fd   :  { %v3948_v32 = vmul.f32 %v3420_v24, %v658_v23  ;;  %v34_v23 = vld [vmem:[%s4796_s0 + $0x38] sm:$0xff] }
 0x6fe   :  { %188 = vmatmul.mubr.f32.gmra.mxu0 %v34_v23 }
 0x6ff   :  { %193 = vmatprep.mubr.f32.mxu0 %v3610_v3 }
 0x701   :  { %v660_v29 = vpop.permute.xlu1 %659 }
 0x702   :  { %v3950_v33 = vmul.f32 %v3422_v28, %v660_v29 }
 0x704   :  { %v665_v27 = vpack.c.bf16 %v3950_v33, %v3948_v32 }
 0x706   :  { %v667_v34 = vrot.slane %v665_v27, 2 }
 0x708   :  { %2898 = vmatmul.mubr.msk.bf16.vlgmr.msra.gmra.mxu1 %vm274_vm1, %v667_v34  ;;  %v35_v34 = vld [vmem:[%s4796_s0 + $0x40] sm:$0xff] }
 0x709   :  { %941 = vmatpush1.bf16.msra.mxu1 %v3698_v14  ;;  %964 = vmatprep.mubr.bf16.mxu1 %v3611_v4 }
 0x70a   :  { %942 = vmatprep.subr.bf16.mxu1 %v3711_v17  ;;  %194 = vmatmul.mubr.f32.gmra.mxu0 %v35_v34 }
 0x70b   :  { %199 = vmatprep.mubr.f32.mxu0 %v3610_v3 }
 0x70d   :  { %943 = vmatpush1.bf16.msra.mxu1 %v3719_v19 }
 0x70e   :  { %944 = vmatprep.subr.bf16.mxu1 %v3731_v22 }
 0x711   :  { %945 = vmatpush1.bf16.msra.mxu1 %v3743_v25 }
 0x712   :  { %946 = vmatprep.subr.bf16.mxu1 %v3749_v26 }
 0x715   :  { %947 = vmatpush1.bf16.msra.mxu1 %v3764_v30 }
 0x716   :  { %1216 = vmatprep.subr.bf16.mxu1 %v3690_v12 }
 0x7c8   :  { %v705_v41 = vpop.f32.mrf.mxu1 }
 0x7c9   :  { %v723_v50 = vrot.slane %v705_v41, 2 }
 0x7ca   :  { %v707_v42 = vpop.f32.mrf.mxu1 }
 0x7cb   :  { %v724_v43 = vrot.slane %v707_v42, 2  ;;  %v733_v62 = vadd.f32 %v723_v50, %v714_v61  ;;  %v177_v42 = vpop.f32.mrf.mxu0 }
 0x7cc   :  { %v709_v48 = vpop.f32.mrf.mxu1 }
 0x7cd   :  { %v3966_v52 = vadd.f32 %v724_v43, %v715_v46  ;;  %v725_v54 = vrot.slane %v709_v48, 2  ;;  %v2899_v63 = vmul.f32 -1.442695, %v733_v62  ;;  %v179_v46 = vpop.f32.mrf.mxu0 }
 0x7ce   :  { %v711_v57 = vpop.f32.mrf.mxu1  ;;  %v180_v48 = vadd.f32 %v179_v46, %v3839_v51 }
 0x7cf   :  { %v726_v36 = vsel %vm722_vm3, %v723_v50, %v725_v54  ;;  %v727_v12 = vrot.slane %v711_v57, 2  ;;  %3423 = vtanh.f32 %v3966_v52  ;;  %v183_v50 = vpop.f32.mrf.mxu0 }
 0x7d0   :  { %v735_v0 = vadd.f32 %v726_v36, %v172_v37  ;;  %v184_v54 = vadd.f32 %v183_v50, %v3837_v49 }
 0x7d1   :  { %v728_v39 = vsel %vm722_vm3, %v724_v43, %v727_v12  ;;  %v4013_v43 = vadd.f32 %v177_v42, %v3837_v49  ;;  %v185_v57 = vpop.f32.mrf.mxu0 }
 0x7d2   :  { %v3971_v58 = vadd.f32 %v728_v39, %v174_v40  ;;  %v2901_v2 = vmul.f32 -1.442695, %v735_v0  ;;  %218 = vst [vmem:[#allocation2 + $0x58] sm:$0xff] %v184_v54  ;;  %v186_v36 = vadd.f32 %v185_v57, %v3839_v51 }
 0x7d3   :  { %v189_v12 = vpop.f32.mrf.mxu0 }
 0x7d4   :  { %3425 = vtanh.f32 %v3971_v58  ;;  %219 = vst [vmem:[#allocation2 + $0x10] sm:$0xff] %v186_v36  ;;  %v190_v39 = vadd.f32 %v189_v12, %v3837_v49  ;;  %v2902_v62 = vmul.f32 -1.442695, %v3971_v58 }
 0x7d5   :  { %3427 = vpow2.f32 %v2899_v63 }
 0x7d6   :  { %3429 = vpow2.f32 %v2901_v2  ;;  %220 = vst [vmem:[#allocation2 + $0x98] sm:$0xff] %v190_v39 }
 0x7d9   :  { %v855_v34 = vld [vmem:[#allocation2 + $0x58] sm:$0x3] }
 0x7dc   :  { %v3424_v59 = vpop.eup %3423 }
 0x7dd   :  { %774 = vrot.lane.b32.xlu0 %v3424_v59, %s3612_s2  ;;  %v191_v59 = vpop.f32.mrf.mxu0 }
 0x7de   :  { %v192_v61 = vadd.f32 %v191_v59, %v3839_v51 }
 0x7e0   :  { %221 = vst [vmem:[#allocation2 + $0x60] sm:$0xff] %v192_v61 }
 0x7e1   :  { %v3426_v60 = vpop.eup %3425 }
 0x7e2   :  { %776 = vrot.lane.b32.xlu1 %v3426_v60, %s3612_s2  ;;  %v3428_v5 = vpop.eup %3427  ;;  %v2900_v60 = vmul.f32 -1.442695, %v3966_v52 }
 0x7e3   :  { %v749_v6 = vadd.f32 1.0, %v3428_v5  ;;  %v3430_v10 = vpop.eup %3429 }
 0x7e4   :  { %v751_v47 = vadd.f32 1.0, %v3430_v10 }
 0x7e5   :  { %3431 = vrcp.f32 %v749_v6 }
 0x7e6   :  { %3433 = vrcp.f32 %v751_v47 }
 0x7f2   :  { %v3432_v53 = vpop.eup %3431 }
 0x7f3   :  { %v3434_v15 = vpop.eup %3433  ;;  %v770_v24 = vmul.f32 %v3432_v53, %v765_v9  ;;  %v36_v9 = vld [vmem:[%s4796_s0 + $0x48] sm:$0xff] }
 0x7f4   :  { %v771_v27 = vmul.f32 %v3434_v15, %v3940_v11  ;;  %200 = vmatmul.mubr.f32.gmra.mxu0 %v36_v9 }
 0x7f5   :  { %842 = vmatprep.mubr.bf16.mxu0 %v3611_v4 }
 0x84f   :  { %v775_v31 = vpop.permute.xlu0 %774 }
 0x850   :  { %v780_v13 = vmul.f32 %v3432_v53, %v775_v31 }
 0x852   :  { %784 = vrot.lane.b32.xlu0 %v780_v13, %s3612_s2 }
 0x854   :  { %v777_v16 = vpop.permute.xlu1 %776 }
 0x855   :  { %v781_v18 = vmul.f32 %v3434_v15, %v777_v16  ;;  %v195_v15 = vpop.f32.mrf.mxu0 }
 0x856   :  { %v196_v16 = vadd.f32 %v195_v15, %v3837_v49 }
 0x857   :  { %786 = vrot.lane.b32.xlu1 %v781_v18, %s3612_s2  ;;  %v197_v18 = vpop.f32.mrf.mxu0 }
 0x858   :  { %222 = vst [vmem:[#allocation2 + $0x20] sm:$0xff] %v196_v16 }
 0x8b4   :  { %v201_v20 = vpop.f32.mrf.mxu0 }
 0x8c4   :  { %v785_v28 = vpop.permute.xlu0 %784 }
 0x8c5   :  { %v790_v29 = vadd.f32 %v785_v28, %v770_v24  ;;  %v856_v24 = vld [vmem:[#allocation2 + $0x10] sm:$0x3] }
 0x8c7   :  { %3435 = vtanh.f32 %v790_v29  ;;  %v889_v38 = vrot.slane %v790_v29, 6 }
 0x8c9   :  { %v787_v35 = vpop.permute.xlu1 %786 }
 0x8ca   :  { %v3996_v37 = vadd.f32 %v787_v35, %v771_v27 }
 0x8cc   :  { %3437 = vtanh.f32 %v3996_v37  ;;  %v890_v1 = vrot.slane %v3996_v37, 6 }
 0x8cd   :  { %3439 = vpow2.f32 %v2900_v60 }
 0x8ce   :  { %v4008_v11 = vsel %vm444_vm0, %v889_v38, %v890_v1  ;;  %3441 = vpow2.f32 %v2902_v62 }
 0x8d4   :  { %v3436_v40 = vpop.eup %3435 }
 0x8d5   :  { %796 = vrot.lane.b32.xlu0 %v3436_v40, %s3612_s2 }
 0x8d9   :  { %v3438_v41 = vpop.eup %3437 }
 0x8da   :  { %798 = vrot.lane.b32.xlu1 %v3438_v41, %s3612_s2  ;;  %v3440_v63 = vpop.eup %3439 }
 0x8db   :  { %v3442_v0 = vpop.eup %3441  ;;  %v750_v2 = vadd.f32 1.0, %v3440_v63 }
 0x8dc   :  { %v752_v5 = vadd.f32 1.0, %v3442_v0 }
 0x8dd   :  { %3443 = vrcp.f32 %v750_v2 }
 0x8de   :  { %3445 = vrcp.f32 %v752_v5 }
 0x8ea   :  { %v3444_v10 = vpop.eup %3443 }
 0x8eb   :  { %v3446_v47 = vpop.eup %3445 }
 0x947   :  { %v797_v6 = vpop.permute.xlu0 %796 }
 0x948   :  { %v4022_v31 = vmul.f32 %v3444_v10, %v797_v6 }
 0x94c   :  { %v799_v53 = vpop.permute.xlu1 %798 }
 0x94d   :  { %v4024_v52 = vmul.f32 %v3446_v47, %v799_v53 }
 0x94f   :  { %v804_v58 = vpack.c.bf16 %v4024_v52, %v4022_v31 }
 0x951   :  { %v806_v13 = vrot.slane %v804_v58, 3 }
 0x953   :  { %2903 = vmatmul.mubr.msk.bf16.vlgmr.msra.gmra.mxu0 %vm274_vm1, %v806_v13 }
 0x954   :  { %1079 = vmatpush1.bf16.msra.mxu0 %v3698_v14  ;;  %1102 = vmatprep.mubr.bf16.mxu0 %v3611_v4  ;;  %v198_v14 = vadd.f32 %v197_v18, %v3839_v51 }
 0x955   :  { %1080 = vmatprep.subr.bf16.mxu0 %v3711_v17  ;;  %v4040_v17 = vadd.f32 %v201_v20, %v3837_v49 }
 0x956   :  { %223 = vst [vmem:[#allocation2 + $0x48] sm:$0xff] %v198_v14 }
 0x958   :  { %1081 = vmatpush1.bf16.msra.mxu0 %v3719_v19  ;;  %v203_v19 = vpop.f32.mrf.mxu0 }
 0x959   :  { %1082 = vmatprep.subr.bf16.mxu0 %v3731_v22  ;;  %v4043_v22 = vadd.f32 %v203_v19, %v3839_v51 }
 0x95c   :  { %1083 = vmatpush1.bf16.msra.mxu0 %v3743_v25 }
 0x95d   :  { %1084 = vmatprep.subr.bf16.mxu0 %v3749_v26 }
 0x960   :  { %1085 = vmatpush1.bf16.msra.mxu0 %v3764_v30 }
 0xa13   :  { %v844_v25 = vpop.f32.mrf.mxu0 }
 0xa14   :  { %v857_v49 = vadd.f32 %v844_v25, %v4013_v43 }
 0xa15   :  { %v846_v26 = vpop.f32.mrf.mxu0 }
 0xa16   :  { %v858_v21 = vadd.f32 %v846_v26, %v180_v48  ;;  %v2904_v51 = vmul.f32 -1.442695, %v857_v49  ;;  %v3603_v26 = vld [vmem:[%s4795_s3 + $0x30] ss:$8 sps:$4 sm:$0xff]  }
 0xa17   :  { %v848_v30 = vpop.f32.mrf.mxu0 }
 0xa18   :  { %3447 = vtanh.f32 %v858_v21  ;;  %v859_v35 = vadd.f32 %v855_v34, %v848_v30  ;;  %v2905_v5 = vmul.f32 -1.442695, %v858_v21  ;;  %v3604_v21 = vld [vmem:[%s4795_s3 + $0x24] ss:$8 sps:$4 sm:$0xff]   ;;  %v3605_v30 = vld [vmem:[%s4795_s3 + $0x20] ss:$8 sps:$4 sm:$0xff]  }
 0xa19   :  { %v850_v23 = vpop.f32.mrf.mxu0  ;;  %v976_v34 = vld [vmem:[#allocation2 + $0x10] sm:$0xfc] }
 0xa1a   :  { %v860_v28 = vadd.f32 %v856_v24, %v850_v23  ;;  %v2906_v38 = vmul.f32 -1.442695, %v859_v35  ;;  %v3606_v23 = vld [vmem:[%s4795_s3 + $0x14] ss:$8 sps:$4 sm:$0xff]   ;;  %v3607_v24 = vld [vmem:[%s4795_s3 + $0x10] ss:$8 sps:$4 sm:$0xff]  }
 0xa1c   :  { %3449 = vtanh.f32 %v860_v28  ;;  %v2907_v37 = vmul.f32 -1.442695, %v860_v28  ;;  %v3609_v28 = vld [vmem:[%s4795_s3] ss:$8 sps:$4 sm:$0xff]  }
 0xa1d   :  { %3451 = vpow2.f32 %v2904_v51 }
 0xa1e   :  { %3453 = vpow2.f32 %v2906_v38 }
 0xa25   :  { %v3448_v29 = vpop.eup %3447 }
 0xa26   :  { %898 = vrot.lane.b32.xlu0 %v3448_v29, %s3612_s2 }
 0xa29   :  { %v3450_v27 = vpop.eup %3449 }
 0xa2a   :  { %900 = vrot.lane.b32.xlu1 %v3450_v27, %s3612_s2  ;;  %v3452_v9 = vpop.eup %3451 }
 0xa2b   :  { %v873_v40 = vadd.f32 1.0, %v3452_v9  ;;  %v3454_v41 = vpop.eup %3453 }
 0xa2c   :  { %v875_v42 = vadd.f32 1.0, %v3454_v41 }
 0xa2d   :  { %3455 = vrcp.f32 %v873_v40 }
 0xa2e   :  { %3457 = vrcp.f32 %v875_v42 }
 0xa3a   :  { %v3456_v46 = vpop.eup %3455 }
 0xa3b   :  { %v3458_v54 = vpop.eup %3457  ;;  %v894_v36 = vmul.f32 %v3456_v46, %v4008_v11 }
 0xa3c   :  { %v895_v59 = vmul.f32 %v3458_v54, %v890_v1 }
 0xa98   :  { %v899_v48 = vpop.permute.xlu0 %898 }
 0xa99   :  { %v904_v50 = vmul.f32 %v3456_v46, %v899_v48  ;;  %v978_v46 = vld [vmem:[#allocation2 + $0x60] sm:$0xf] }
 0xa9b   :  { %908 = vrot.lane.b32.xlu0 %v904_v50, %s3612_s2 }
 0xa9c   :  { %v901_v57 = vpop.permute.xlu1 %900 }
 0xa9d   :  { %v905_v43 = vmul.f32 %v3458_v54, %v901_v57 }
 0xa9f   :  { %910 = vrot.lane.b32.xlu1 %v905_v43, %s3612_s2  ;;  %v975_v43 = vld [vmem:[#allocation2 + $0x58] sm:$0xfc] }
 0xb0d   :  { %v909_v12 = vpop.permute.xlu0 %908 }
 0xb0e   :  { %v4051_v39 = vadd.f32 %v909_v12, %v894_v36 }
 0xb10   :  { %3459 = vtanh.f32 %v4051_v39  ;;  %v1025_v62 = vrot.slane %v4051_v39, 6 }
 0xb11   :  { %v911_v60 = vpop.permute.xlu1 %910 }
 0xb12   :  { %v915_v61 = vadd.f32 %v911_v60, %v895_v59  ;;  %v977_v59 = vld [vmem:[#allocation2 + $0x98] sm:$0xf] }
 0xb14   :  { %3461 = vtanh.f32 %v915_v61  ;;  %v1026_v63 = vrot.slane %v915_v61, 6 }
 0xb15   :  { %3463 = vpow2.f32 %v2905_v5 }
 0xb16   :  { %v4060_v0 = vsel %vm444_vm0, %v1025_v62, %v1026_v63  ;;  %3465 = vpow2.f32 %v2907_v37 }
 0xb1d   :  { %v3460_v11 = vpop.eup %3459 }
 0xb1e   :  { %920 = vrot.lane.b32.xlu0 %v3460_v11, %s3612_s2 }
 0xb21   :  { %v3462_v2 = vpop.eup %3461 }
 0xb22   :  { %922 = vrot.lane.b32.xlu1 %v3462_v2, %s3612_s2  ;;  %v3464_v1 = vpop.eup %3463 }
 0xb23   :  { %v3466_v6 = vpop.eup %3465  ;;  %v874_v10 = vadd.f32 1.0, %v3464_v1 }
 0xb24   :  { %v876_v47 = vadd.f32 1.0, %v3466_v6 }
 0xb25   :  { %3467 = vrcp.f32 %v874_v10 }
 0xb26   :  { %3469 = vrcp.f32 %v876_v47 }
 0xb32   :  { %v3468_v58 = vpop.eup %3467 }
 0xb33   :  { %v3470_v15 = vpop.eup %3469 }
 0xb90   :  { %v921_v53 = vpop.permute.xlu0 %920 }
 0xb91   :  { %v4064_v13 = vmul.f32 %v3468_v58, %v921_v53 }
 0xb93   :  { %v1384_v14 = vrot.slane %v4064_v13, 2 }
 0xb94   :  { %v923_v16 = vpop.permute.xlu1 %922 }
 0xb95   :  { %v4066_v18 = vmul.f32 %v3470_v15, %v923_v16 }
 0xb97   :  { %v928_v20 = vpack.c.bf16 %v4066_v18, %v4064_v13  ;;  %v1385_v19 = vrot.slane %v4066_v18, 2 }
 0xb99   :  { %2908 = vmatmul.mubr.msk.bf16.vlgmr.msra.gmra.mxu1 %vm274_vm1, %v928_v20  ;;  %v4076_v25 = vsel %vm722_vm3, %v1384_v14, %v1385_v19 }
 0xb9a   :  { %1217 = vmatpush1.bf16.msra.mxu1 %v3603_v26  ;;  %1240 = vmatprep.mubr.bf16.mxu1 %v3611_v4  ;;  %v3608_v4 = vld [vmem:[%s4795_s3 + $0x4] ss:$8 sps:$4 sm:$0xff]  }
 0xb9b   :  { %1218 = vmatprep.subr.bf16.mxu1 %v3604_v21 }
 0xb9e   :  { %1219 = vmatpush1.bf16.msra.mxu1 %v3605_v30 }
 0xb9f   :  { %1220 = vmatprep.subr.bf16.mxu1 %v3606_v23 }
 0xba2   :  { %1221 = vmatpush1.bf16.msra.mxu1 %v3607_v24 }
 0xba3   :  { %1222 = vmatprep.subr.bf16.mxu1 %v3608_v4 }
 0xba6   :  { %1223 = vmatpush1.bf16.msra.mxu1 %v3609_v28 }
 0xc59   :  { %v966_v29 = vpop.f32.mrf.mxu1 }
 0xc5a   :  { %v983_v35 = vrot.slane %v966_v29, 6 }
 0xc5b   :  { %v968_v27 = vpop.f32.mrf.mxu1 }
 0xc5c   :  { %v984_v49 = vrot.slane %v968_v27, 6  ;;  %v993_v36 = vadd.f32 %v983_v35, %v975_v43 }
 0xc5d   :  { %v970_v51 = vpop.f32.mrf.mxu1 }
 0xc5e   :  { %v994_v38 = vadd.f32 %v984_v49, %v976_v34  ;;  %v985_v9 = vrot.slane %v970_v51, 6  ;;  %v2909_v12 = vmul.f32 -1.442695, %v993_v36  ;;  %v1403_v34 = vrot.slane %v3950_v33, 2 }
 0xc5f   :  { %v972_v40 = vpop.f32.mrf.mxu1 }
 0xc60   :  { %v986_v41 = vsel %vm444_vm0, %v983_v35, %v985_v9  ;;  %v987_v42 = vrot.slane %v972_v40, 6  ;;  %3471 = vtanh.f32 %v994_v38  ;;  %v2910_v24 = vmul.f32 -1.442695, %v994_v38 }
 0xc61   :  { %v995_v60 = vadd.f32 %v986_v41, %v977_v59  ;;  %v1402_v9 = vrot.slane %v3948_v32, 2  ;;  %v1394_v40 = vrot.slane %v4024_v52, 6 }
 0xc62   :  { %v988_v48 = vsel %vm444_vm0, %v984_v49, %v987_v42  ;;  %v4121_v49 = vand.u32 127, %v71_v44 }
 0xc63   :  { %v996_v50 = vadd.f32 %v988_v48, %v978_v46  ;;  %v2911_v61 = vmul.f32 -1.442695, %v995_v60  ;;  %v1404_v44 = vsel %vm722_vm3, %v1402_v9, %v1403_v34 }
 0xc64   :  { %v1346_v51 = vand.u32 31, %v4121_v49 }
 0xc65   :  { %3473 = vtanh.f32 %v996_v50 }
 0xc66   :  { %3475 = vpow2.f32 %v2909_v12  ;;  %vm4129_vm4 = vcmp.lt.s32.totalorder %v1346_v51, 16 }
 0xc67   :  { %3477 = vpow2.f32 %v2911_v61  ;;  %v1399_v46 = vsel %vm4129_vm4, %v4066_v18, %v1394_v40 }
 0xc6d   :  { %v3472_v54 = vpop.eup %3471 }
 0xc6e   :  { %1034 = vrot.lane.b32.xlu0 %v3472_v54, %s3612_s2 }
 0xc72   :  { %v3474_v57 = vpop.eup %3473 }
 0xc73   :  { %1036 = vrot.lane.b32.xlu1 %v3474_v57, %s3612_s2  ;;  %v3476_v63 = vpop.eup %3475 }
 0xc74   :  { %v1009_v11 = vadd.f32 1.0, %v3476_v63  ;;  %v3478_v2 = vpop.eup %3477  ;;  %v1389_v63 = vsel %vm4129_vm4, %v4022_v31, %v1384_v14 }
 0xc75   :  { %v1011_v5 = vadd.f32 1.0, %v3478_v2 }
 0xc76   :  { %3479 = vrcp.f32 %v1009_v11 }
 0xc77   :  { %3481 = vrcp.f32 %v1011_v5 }
 0xc83   :  { %v3480_v37 = vpop.eup %3479 }
 0xc84   :  { %v3482_v10 = vpop.eup %3481  ;;  %v1030_v58 = vmul.f32 %v3480_v37, %v1025_v62 }
 0xc85   :  { %v1031_v20 = vmul.f32 %v3482_v10, %v4060_v0  ;;  %v2912_v0 = vmul.f32 -1.442695, %v996_v50 }
 0xce0   :  { %v1035_v1 = vpop.permute.xlu0 %1034 }
 0xce1   :  { %v1040_v6 = vmul.f32 %v3480_v37, %v1035_v1  ;;  %v1114_v1 = vld [vmem:[#allocation2 + $0x60] sm:$0xf0] }
 0xce3   :  { %1044 = vrot.lane.b32.xlu0 %v1040_v6, %s3612_s2 }
 0xce5   :  { %v1037_v47 = vpop.permute.xlu1 %1036 }
 0xce6   :  { %v1041_v53 = vmul.f32 %v3482_v10, %v1037_v47 }
 0xce8   :  { %1046 = vrot.lane.b32.xlu1 %v1041_v53, %s3612_s2 }
 0xd55   :  { %v1045_v15 = vpop.permute.xlu0 %1044 }
 0xd56   :  { %v4108_v16 = vadd.f32 %v1045_v15, %v1030_v58 }
 0xd58   :  { %3483 = vtanh.f32 %v4108_v16  ;;  %v1163_v21 = vrot.slane %v4108_v16, 6 }
 0xd5a   :  { %v1047_v19 = vpop.permute.xlu1 %1046 }
 0xd5b   :  { %v1051_v26 = vadd.f32 %v1047_v19, %v1031_v20  ;;  %v1116_v19 = vld [vmem:[#allocation2 + $0x48] sm:$0x3f] }
 0xd5d   :  { %3485 = vtanh.f32 %v1051_v26  ;;  %v1164_v30 = vrot.slane %v1051_v26, 6 }
 0xd5e   :  { %3487 = vpow2.f32 %v2910_v24 }
 0xd5f   :  { %v4116_v23 = vsel %vm444_vm0, %v1163_v21, %v1164_v30  ;;  %3489 = vpow2.f32 %v2912_v0 }
 0xd65   :  { %v3484_v39 = vpop.eup %3483 }
 0xd66   :  { %1056 = vrot.lane.b32.xlu0 %v3484_v39, %s3612_s2 }
 0xd6a   :  { %v3486_v62 = vpop.eup %3485 }
 0xd6b   :  { %1058 = vrot.lane.b32.xlu1 %v3486_v62, %s3612_s2  ;;  %v3488_v4 = vpop.eup %3487  ;;  %v1113_v62 = vld [vmem:[#allocation2 + $0x98] sm:$0xf0] }
 0xd6c   :  { %v1010_v28 = vadd.f32 1.0, %v3488_v4  ;;  %v3490_v29 = vpop.eup %3489  ;;  %v1115_v4 = vld [vmem:[#allocation2 + $0x20] sm:$0x3f] }
 0xd6d   :  { %v1012_v27 = vadd.f32 1.0, %v3490_v29 }
 0xd6e   :  { %3491 = vrcp.f32 %v1010_v28 }
 0xd6f   :  { %3493 = vrcp.f32 %v1012_v27 }
 0xd7b   :  { %v3492_v35 = vpop.eup %3491 }
 0xd7c   :  { %v3494_v54 = vpop.eup %3493 }
 0xdd8   :  { %v1057_v38 = vpop.permute.xlu0 %1056 }
 0xdd9   :  { %v4127_v41 = vmul.f32 %v3492_v35, %v1057_v38 }
 0xddb   :  { %v1407_v48 = vsel %vm4129_vm4, %v4127_v41, %v1404_v44  ;;  %v1375_v36 = vrot.slane %v4127_v41, 6 }
 0xddc   :  { %v4145_v50 = vsel %vm444_vm0, %v1399_v46, %v1407_v48 }
 0xddd   :  { %v1059_v57 = vpop.permute.xlu1 %1058 }
 0xdde   :  { %v4147_v43 = vmul.f32 %v3494_v54, %v1059_v57 }
 0xde0   :  { %v1064_v12 = vpack.c.bf16 %v4147_v43, %v4127_v41  ;;  %v1376_v59 = vrot.slane %v4147_v43, 6 }
 0xde2   :  { %v1066_v60 = vrot.slane %v1064_v12, 1  ;;  %v1377_v18 = vsel %vm444_vm0, %v1375_v36, %v1376_v59 }
 0xde3   :  { %v1381_v61 = vsel %vm4129_vm4, %v3950_v33, %v1377_v18 }
 0xde4   :  { %2913 = vmatmul.mubr.msk.bf16.vlgmr.msra.gmra.mxu0 %vm274_vm1, %v1066_v60  ;;  %v4166_v11 = vsel %vm722_vm3, %v1381_v61, %v1389_v63 }
 0xea4   :  { %v1104_v2 = vpop.f32.mrf.mxu0 }
 0xea5   :  { %v1121_v10 = vrot.slane %v1104_v2, 4 }
 0xea6   :  { %v1106_v5 = vpop.f32.mrf.mxu0 }
 0xea7   :  { %v1122_v37 = vrot.slane %v1106_v5, 4  ;;  %v1131_v24 = vadd.f32 %v1121_v10, %v1113_v62 }
 0xea8   :  { %v1108_v6 = vpop.f32.mrf.mxu0 }
 0xea9   :  { %v1132_v47 = vadd.f32 %v1122_v37, %v1114_v1  ;;  %v1123_v53 = vrot.slane %v1108_v6, 4  ;;  %v2914_v0 = vmul.f32 -1.442695, %v1131_v24 }
 0xeaa   :  { %v1110_v58 = vpop.f32.mrf.mxu0 }
 0xeab   :  { %v1124_v15 = vsel %vm583_vm2, %v1121_v10, %v1123_v53  ;;  %v1125_v20 = vrot.slane %v1110_v58, 4  ;;  %3495 = vtanh.f32 %v1132_v47  ;;  %v2915_v1 = vmul.f32 -1.442695, %v1132_v47 }
 0xeac   :  { %v1133_v28 = vadd.f32 %v1124_v15, %v1115_v4  ;;  %v1408_v47 = vsel %vm4129_vm4, %v4147_v43, %v1403_v34 }
 0xead   :  { %v1126_v14 = vsel %vm583_vm2, %v1122_v37, %v1125_v20 }
 0xeae   :  { %v1134_v26 = vadd.f32 %v1126_v14, %v1116_v19  ;;  %v2916_v29 = vmul.f32 -1.442695, %v1133_v28  ;;  %v1411_v19 = vrot.slane %v3906_v7, 6 }
 0xeb0   :  { %3497 = vtanh.f32 %v1134_v26 }
 0xeb1   :  { %3499 = vpow2.f32 %v2914_v0 }
 0xeb2   :  { %3501 = vpow2.f32 %v2916_v29  ;;  %v1380_v29 = vsel %vm4129_vm4, %v3948_v32, %v1375_v36 }
 0xeb8   :  { %v3496_v30 = vpop.eup %3495 }
 0xeb9   :  { %1172 = vrot.lane.b32.xlu0 %v3496_v30, %s3612_s2 }
 0xebd   :  { %v3498_v39 = vpop.eup %3497 }
 0xebe   :  { %1174 = vrot.lane.b32.xlu1 %v3498_v39, %s3612_s2  ;;  %v3500_v27 = vpop.eup %3499 }
 0xebf   :  { %v1147_v51 = vadd.f32 1.0, %v3500_v27  ;;  %v3502_v35 = vpop.eup %3501 }
 0xec0   :  { %v1149_v9 = vadd.f32 1.0, %v3502_v35 }
 0xec1   :  { %3503 = vrcp.f32 %v1147_v51 }
 0xec2   :  { %3505 = vrcp.f32 %v1149_v9 }
 0xece   :  { %v3504_v38 = vpop.eup %3503 }
 0xecf   :  { %v3506_v48 = vpop.eup %3505  ;;  %v1168_v12 = vmul.f32 %v3504_v38, %v1163_v21 }
 0xed0   :  { %v1169_v18 = vmul.f32 %v3506_v48, %v4116_v23  ;;  %v2917_v23 = vmul.f32 -1.442695, %v1134_v26 }
 0xf2b   :  { %v1173_v44 = vpop.permute.xlu0 %1172 }
 0xf2c   :  { %v1178_v46 = vmul.f32 %v3504_v38, %v1173_v44  ;;  %v1252_v38 = vld [vmem:[#allocation2 + $0x48] sm:$0xc0] }
 0xf2e   :  { %1182 = vrot.lane.b32.xlu0 %v1178_v46, %s3612_s2 }
 0xf30   :  { %v1175_v54 = vpop.permute.xlu1 %1174 }
 0xf31   :  { %v1179_v57 = vmul.f32 %v3506_v48, %v1175_v54 }
 0xf33   :  { %1184 = vrot.lane.b32.xlu1 %v1179_v57, %s3612_s2 }
 0xfa0   :  { %v1183_v59 = vpop.permute.xlu0 %1182 }
 0xfa1   :  { %v4176_v60 = vadd.f32 %v1183_v59, %v1168_v12 }
 0xfa3   :  { %3507 = vtanh.f32 %v4176_v60  ;;  %v1301_v2 = vrot.slane %v4176_v60, 6  ;;  %v1436_v60 = vld [vmem:[%s4798_s4 + $0x18] sm:$0xff] }
 0xfa5   :  { %v1185_v61 = vpop.permute.xlu1 %1184 }
 0xfa6   :  { %v1189_v63 = vadd.f32 %v1185_v61, %v1169_v18  ;;  %v1251_v61 = vld [vmem:[#allocation2 + $0x20] sm:$0xc0] }
 0xfa8   :  { %3509 = vtanh.f32 %v1189_v63  ;;  %v1302_v5 = vrot.slane %v1189_v63, 6 }
 0xfa9   :  { %3511 = vpow2.f32 %v2915_v1 }
 0xfaa   :  { %v4184_v37 = vsel %vm444_vm0, %v1301_v2, %v1302_v5  ;;  %3513 = vpow2.f32 %v2917_v23 }
 0xfb0   :  { %v3508_v16 = vpop.eup %3507 }
 0xfb1   :  { %1194 = vrot.lane.b32.xlu0 %v3508_v16, %s3612_s2 }
 0xfb5   :  { %v3510_v21 = vpop.eup %3509 }
 0xfb6   :  { %1196 = vrot.lane.b32.xlu1 %v3510_v21, %s3612_s2  ;;  %v3512_v6 = vpop.eup %3511 }
 0xfb7   :  { %v1148_v10 = vadd.f32 1.0, %v3512_v6  ;;  %v3514_v53 = vpop.eup %3513 }
 0xfb8   :  { %v1150_v58 = vadd.f32 1.0, %v3514_v53 }
 0xfb9   :  { %3515 = vrcp.f32 %v1148_v10 }
 0xfba   :  { %3517 = vrcp.f32 %v1150_v58 }
 0xfc6   :  { %v3516_v15 = vpop.eup %3515 }
 0xfc7   :  { %v3518_v39 = vpop.eup %3517 }
0x1023   :  { %v1195_v20 = vpop.permute.xlu0 %1194 }
0x1024   :  { %v1200_v14 = vmul.f32 %v3516_v15, %v1195_v20 }
0x1026   :  { %v1416_v26 = vsel %vm4129_vm4, %v1200_v14, %v1411_v19  ;;  %v1366_v0 = vrot.slane %v1200_v14, 2 }
0x1027   :  { %v4199_v30 = vsel %vm583_vm2, %v1408_v47, %v1416_v26  ;;  %v1439_v47 = vld [vmem:[%s4798_s4 + $0x30] sm:$0xff] }
0x1028   :  { %v1197_v62 = vpop.permute.xlu1 %1196 }
0x1029   :  { %v4201_v24 = vmul.f32 %v3518_v39, %v1197_v62 }
0x102b   :  { %v1202_v4 = vpack.c.bf16 %v4201_v24, %v1200_v14  ;;  %v1367_v33 = vrot.slane %v4201_v24, 2 }
0x102d   :  { %v1204_v28 = vrot.slane %v1202_v4, 2  ;;  %v4206_v34 = vsel %vm722_vm3, %v1366_v0, %v1367_v33  ;;  %v1372_v43 = vsel %vm4129_vm4, %v3908_v8, %v1367_v33  ;;  %v1438_v0 = vld [vmem:[%s4798_s4 + $0x28] sm:$0xff] }
0x102e   :  { %v4217_v27 = vsel %vm583_vm2, %v1372_v43, %v1380_v29  ;;  %v1433_v29 = vld [vmem:[%s4798_s4] sm:$0xff] }
0x102f   :  { %2918 = vmatmul.mubr.msk.bf16.vlgmr.msra.gmra.mxu1 %vm274_vm1, %v1204_v28  ;;  %v1437_v28 = vld [vmem:[%s4798_s4 + $0x20] sm:$0xff] }
0x10ef   :  { %v1242_v51 = vpop.f32.mrf.mxu1 }
0x10f0   :  { %v1259_v46 = vrot.slane %v1242_v51, 2 }
0x10f1   :  { %v1244_v35 = vpop.f32.mrf.mxu1 }
0x10f2   :  { %v1260_v9 = vrot.slane %v1244_v35, 2  ;;  %v1269_v63 = vadd.f32 %v1259_v46, %v1251_v61 }
0x10f3   :  { %v1246_v44 = vpop.f32.mrf.mxu1 }
0x10f4   :  { %v4220_v48 = vadd.f32 %v1260_v9, %v1252_v38  ;;  %v1261_v54 = vrot.slane %v1246_v44, 2  ;;  %v2919_v5 = vmul.f32 -1.442695, %v1269_v63 }
0x10f5   :  { %v1248_v57 = vpop.f32.mrf.mxu1 }
0x10f6   :  { %v1262_v41 = vsel %vm722_vm3, %v1259_v46, %v1261_v54  ;;  %v1263_v12 = vrot.slane %v1248_v57, 2  ;;  %3519 = vtanh.f32 %v4220_v48 }
0x10f7   :  { %v1271_v16 = vadd.f32 %v1262_v41, %v4040_v17  ;;  %v1440_v17 = vld [vmem:[%s4798_s4 + $0x38] sm:$0xff]  ;;  %v1412_v41 = vrot.slane %v3908_v8, 6 }
0x10f8   :  { %v1264_v32 = vsel %vm722_vm3, %v1260_v9, %v1263_v12  ;;  %3116 = vmatprep.subr.mxu0 %v1440_v17  ;;  %v2920_v9 = vmul.f32 -1.442695, %v4220_v48 }
0x10f9   :  { %v4226_v36 = vadd.f32 %v1264_v32, %v4043_v22  ;;  %v2921_v21 = vmul.f32 -1.442695, %v1271_v16  ;;  %3117 = vmatpush3.msra.mxu0 %v1440_v17  ;;  %v1413_v48 = vsel %vm444_vm0, %v1411_v19, %v1412_v41 }
0x10fa   :  { %3118 = vmatprep.subr.mxu0 %v1439_v47  ;;  %v1417_v61 = vsel %vm4129_vm4, %v4201_v24, %v1413_v48 }
0x10fb   :  { %3521 = vtanh.f32 %v4226_v36  ;;  %3119 = vmatpush3.msra.mxu0 %v1439_v47  ;;  %v2922_v38 = vmul.f32 -1.442695, %v4226_v36  ;;  %v1421_v36 = vrot.slane %v3866_v56, 2 }
0x10fc   :  { %3523 = vpow2.f32 %v2919_v5  ;;  %3120 = vmatprep.subr.mxu0 %v1438_v0 }
0x10fd   :  { %3525 = vpow2.f32 %v2921_v21  ;;  %3121 = vmatpush3.msra.mxu0 %v1438_v0 }
0x10fe   :  { %3122 = vmatprep.subr.mxu0 %v1437_v28 }
0x10ff   :  { %3123 = vmatpush3.msra.mxu0 %v1437_v28 }
0x1100   :  { %3124 = vmatprep.subr.mxu0 %v1436_v60 }
0x1101   :  { %3125 = vmatpush3.msra.mxu0 %v1436_v60 }
0x1103   :  { %v3520_v59 = vpop.eup %3519 }
0x1104   :  { %1310 = vrot.lane.b32.xlu0 %v3520_v59, %s3612_s2  ;;  %v1420_v59 = vrot.slane %v3864_v55, 2 }
0x1108   :  { %v3522_v18 = vpop.eup %3521 }
0x1109   :  { %1312 = vrot.lane.b32.xlu1 %v3522_v18, %s3612_s2  ;;  %v3524_v1 = vpop.eup %3523 }
0x110a   :  { %v1285_v23 = vadd.f32 1.0, %v3524_v1  ;;  %v3526_v22 = vpop.eup %3525  ;;  %v1422_v1 = vsel %vm722_vm3, %v1420_v59, %v1421_v36 }
0x110b   :  { %v1287_v6 = vadd.f32 1.0, %v3526_v22 }
0x110c   :  { %3527 = vrcp.f32 %v1285_v23 }
0x110d   :  { %3529 = vrcp.f32 %v1287_v6 }
0x1119   :  { %v3528_v10 = vpop.eup %3527 }
0x111a   :  { %v3530_v15 = vpop.eup %3529  ;;  %v1306_v26 = vmul.f32 %v3528_v10, %v1301_v2  ;;  %v1435_v2 = vld [vmem:[%s4798_s4 + $0x10] sm:$0xff] }
0x111b   :  { %v1307_v4 = vmul.f32 %v3530_v15, %v4184_v37  ;;  %3126 = vmatprep.subr.mxu0 %v1435_v2  ;;  %v1434_v37 = vld [vmem:[%s4798_s4 + $0x8] sm:$0xff] }
0x111c   :  { %3127 = vmatpush3.msra.mxu0 %v1435_v2 }
0x111d   :  { %3128 = vmatprep.subr.mxu0 %v1434_v37 }
0x111e   :  { %3129 = vmatpush3.msra.mxu0 %v1434_v37 }
0x111f   :  { %3130 = vmatprep.subr.mxu0 %v1433_v29 }
0x1120   :  { %3131 = vmatpush3.msra.mxu0 %v1433_v29 }
0x1176   :  { %v1311_v53 = vpop.permute.xlu0 %1310 }
0x1177   :  { %v1316_v58 = vmul.f32 %v3528_v10, %v1311_v53  ;;  %v1371_v10 = vsel %vm4129_vm4, %v3906_v7, %v4206_v34 }
0x1179   :  { %1320 = vrot.lane.b32.xlu0 %v1316_v58, %s3612_s2 }
0x117b   :  { %v1313_v20 = vpop.permute.xlu1 %1312 }
0x117c   :  { %v1317_v14 = vmul.f32 %v3530_v15, %v1313_v20 }
0x117e   :  { %1322 = vrot.lane.b32.xlu1 %v1317_v14, %s3612_s2 }
0x11eb   :  { %v1321_v39 = vpop.permute.xlu0 %1320 }
0x11ec   :  { %v1326_v62 = vadd.f32 %v1321_v39, %v1306_v26 }
0x11ee   :  { %3531 = vtanh.f32 %v1326_v62 }
0x11f0   :  { %v1323_v33 = vpop.permute.xlu1 %1322 }
0x11f1   :  { %v1327_v43 = vadd.f32 %v1323_v33, %v1307_v4  ;;  %v2923_v4 = vld [vmem:[%s4798_s4 + $0x40] ss:$0 sm:$0xff] }
0x11f3   :  { %3533 = vtanh.f32 %v1327_v43 }
0x11f4   :  { %3535 = vpow2.f32 %v2920_v9 }
0x11f5   :  { %3537 = vpow2.f32 %v2922_v38 }
0x11fb   :  { %v3532_v51 = vpop.eup %3531 }
0x11fc   :  { %1332 = vrot.lane.b32.xlu0 %v3532_v51, %s3612_s2 }
0x1200   :  { %v3534_v35 = vpop.eup %3533 }
0x1201   :  { %1334 = vrot.lane.b32.xlu1 %v3534_v35, %s3612_s2  ;;  %v3536_v44 = vpop.eup %3535  ;;  %s3613_s2 = smov 96  }
0x1202   :  { %v1286_v46 = vadd.f32 1.0, %v3536_v44  ;;  %v3538_v54 = vpop.eup %3537 }
0x1203   :  { %v1288_v57 = vadd.f32 1.0, %v3538_v54 }
0x1204   :  { %3539 = vrcp.f32 %v1286_v46  ;;  %v4406_v46 = vmul.u32.u64.low 3435973837, %v4121_v49  ;;  %v4407_v54 = vmul.u32.u64.high 3435973837, %v4121_v49, %v4406_v46 }
0x1205   :  { %3541 = vrcp.f32 %v1288_v57 }
0x1211   :  { %v3540_v12 = vpop.eup %3539 }
0x1212   :  { %v3542_v5 = vpop.eup %3541 }
0x126e   :  { %v1333_v32 = vpop.permute.xlu0 %1332 }
0x126f   :  { %v1338_v18 = vmul.f32 %v3540_v12, %v1333_v32  ;;  %v4410_v12 = vmul.u32.u64.low 3435973837, %v3830_v45  ;;  %v4411_v32 = vmul.u32.u64.high 3435973837, %v3830_v45, %v4410_v12 }
0x1271   :  { %v1425_v63 = vsel %vm4129_vm4, %v1338_v18, %v1420_v59  ;;  %v1357_v23 = vrot.slane %v1338_v18, 6  ;;  %v1816_v59 = vadd.s32 24, %v3830_v45 }
0x1272   :  { %v4277_v8 = vsel %vm722_vm3, %v1417_v61, %v1425_v63  ;;  %v2477_v61 = vshrl.u32 %v4407_v54, 3 }
0x1273   :  { %v1335_v16 = vpop.permute.xlu1 %1334 }
0x1274   :  { %v1339_v21 = vmul.f32 %v3542_v5, %v1335_v16  ;;  %v1815_v5 = vadd.s32 16, %v3830_v45 }
0x1276   :  { %v1358_v22 = vrot.slane %v1339_v21, 6  ;;  %v4282_v19 = vsel %vm4129_vm4, %v1339_v21, %v1422_v1  ;;  %v2478_v1 = vmul.u32 10, %v2477_v61 }
0x1277   :  { %2314 = vrot.lane.b32.xlu1 %v4282_v19, %s3613_s2 }
0x1278   :  { %v1363_v24 = vsel %vm4129_vm4, %v3866_v56, %v1358_v22  ;;  %v1359_v6 = vsel %vm444_vm0, %v1357_v23, %v1358_v22  ;;  %v1393_v56 = vrot.slane %v4022_v31, 6  ;;  %v1829_v23 = vshrl.u32 %v4411_v32, 3 }
0x1279   :  { %v1362_v53 = vsel %vm4129_vm4, %v3864_v55, %v1359_v6  ;;  %v4298_v58 = vsel %vm444_vm0, %v1363_v24, %v1371_v10  ;;  %v4316_v55 = vsel %vm4129_vm4, %v4024_v52, %v4076_v25  ;;  %v1445_v52 = vld [vmem:[%s4799_s5 + $0x18] sm:$0xff]  ;;  %v1443_v25 = vld [vmem:[%s4799_s5 + $0x8] sm:$0xff]  ;;  %v1818_v6 = vadd.s32 40, %v3830_v45 }
0x127a   :  { %3132 = vmatprep.mubr.msk.f32.mxu0 %vm274_vm1, %v1362_v53  ;;  %v1395_v7 = vsel %vm444_vm0, %v1393_v56, %v1394_v40  ;;  %3147 = vmatprep.subr.mxu1 %v1445_v52  ;;  %v1442_v40 = vld [vmem:[%s4799_s5] sm:$0xff]  ;;  %v2479_v56 = vsub.s32 %v4121_v49, %v2478_v1 }
0x127b   :  { %2312 = vrot.lane.b32.xlu1 %v4277_v8, %s3613_s2  ;;  %3133 = vmatmul.mubr.msk.f32.vlgmr.msra.gmra.mxu0 %vm274_vm1, %v4298_v58  ;;  %v1398_v31 = vsel %vm4129_vm4, %v4064_v13, %v1395_v7  ;;  %v1444_v13 = vld [vmem:[%s4799_s5 + $0x10] sm:$0xff] }
0x127c   :  { %3135 = vmatprep.mubr.msk.f32.mxu0 %vm274_vm1, %v4217_v27  ;;  %3148 = vmatpush3.msra.mxu1 %v1445_v52  ;;  %vm2482_vm9 = vcmp.ne.s32.totalorder %v2479_v56, 0  ;;  %vm2483_vm10 = vcmp.lt.s32.totalorder %v2479_v56, 0 }
0x127d   :  { %3149 = vmatprep.subr.mxu1 %v1444_v13  ;;  %vm2484_vm11 = vmand %vm2483_vm10, %vm2482_vm9 }
0x127e   :  { %3150 = vmatpush3.msra.mxu1 %v1444_v13 }
0x127f   :  { %2310 = vrot.lane.b32.xlu1 %v4199_v30, %s3613_s2  ;;  %3136 = vmatmul.mubr.msk.f32.gmra.mxu0 %vm274_vm1, %v4166_v11 }
0x1280   :  { %3138 = vmatprep.mubr.msk.f32.mxu0 %vm274_vm1, %v4316_v55  ;;  %3151 = vmatprep.subr.mxu1 %v1443_v25 }
0x1281   :  { %3152 = vmatpush3.msra.mxu1 %v1443_v25  ;;  %v4429_v13 = vmul.u32.u64.low 3435973837, %v1818_v6  ;;  %v4430_v25 = vmul.u32.u64.high 3435973837, %v1818_v6, %v4429_v13 }
0x1282   :  { %3153 = vmatprep.subr.mxu1 %v1442_v40 }
0x1283   :  { %2308 = vrot.lane.b32.xlu1 %v4145_v50, %s3613_s2  ;;  %3139 = vmatmul.mubr.msk.f32.gmra.mxu0 %vm274_vm1, %v1398_v31 }
0x1284   :  { %3141 = vmatprep.mubr.msk.f32.mxu0 %vm274_vm1, %v4145_v50  ;;  %3154 = vmatpush3.msra.mxu1 %v1442_v40  ;;  %v4433_v40 = vadd.s32 32, %v3830_v45 }
0x1287   :  { %2306 = vrot.lane.b32.xlu1 %v1398_v31, %s3613_s2  ;;  %3142 = vmatmul.mubr.msk.f32.gmra.mxu0 %vm274_vm1, %v4199_v30 }
0x1288   :  { %3144 = vmatprep.mubr.msk.f32.mxu0 %vm274_vm1, %v4277_v8 }
0x128b   :  { %2304 = vrot.lane.b32.xlu1 %v4316_v55, %s3613_s2  ;;  %3145 = vmatmul.mubr.msk.f32.gmra.mxu0 %vm274_vm1, %v4282_v19 }
0x128c   :  { %3232 = vmatprep.mubr.msk.f32.mxu0 %vm1610_vm5, %v1362_v53 }
0x128f   :  { %2302 = vrot.lane.b32.xlu1 %v4166_v11, %s3613_s2 }
0x1293   :  { %2300 = vrot.lane.b32.xlu1 %v4217_v27, %s3613_s2 }
0x1297   :  { %2298 = vrot.lane.b32.xlu1 %v4298_v58, %s3613_s2 }
0x129b   :  { %2296 = vrot.lane.b32.xlu1 %v1362_v53, %s3613_s2 }
0x12e9   :  { %v2315_v42 = vpop.permute.xlu1 %2314 }
0x12ea   :  { %3212 = vmatprep.subr.msk.mxu0 %vm1610_vm5, %v2315_v42 }
0x12eb   :  { %3213 = vmatpush3.xpose.msk.msra.mxu0 %vm1610_vm5, %v2315_v42  ;;  %v2485_v42 = vadd.s32 10, %v2479_v56 }
0x12ed   :  { %v2313_v34 = vpop.permute.xlu1 %2312 }
0x12ee   :  { %3214 = vmatprep.subr.msk.mxu0 %vm1610_vm5, %v2313_v34 }
0x12ef   :  { %3215 = vmatpush3.xpose.msk.msra.mxu0 %vm1610_vm5, %v2313_v34 }
0x12f1   :  { %v2311_v15 = vpop.permute.xlu1 %2310 }
0x12f2   :  { %3216 = vmatprep.subr.msk.mxu0 %vm1610_vm5, %v2311_v15 }
0x12f3   :  { %3217 = vmatpush3.xpose.msk.msra.mxu0 %vm1610_vm5, %v2311_v15 }
0x12f5   :  { %v2309_v20 = vpop.permute.xlu1 %2308 }
0x12f6   :  { %3218 = vmatprep.subr.msk.mxu0 %vm1610_vm5, %v2309_v20 }
0x12f7   :  { %3219 = vmatpush3.xpose.msk.msra.mxu0 %vm1610_vm5, %v2309_v20 }
0x12f9   :  { %v2307_v14 = vpop.permute.xlu1 %2306 }
0x12fa   :  { %3220 = vmatprep.subr.msk.mxu0 %vm1610_vm5, %v2307_v14 }
0x12fb   :  { %3221 = vmatpush3.xpose.msk.msra.mxu0 %vm1610_vm5, %v2307_v14 }
0x12fd   :  { %v2305_v17 = vpop.permute.xlu1 %2304 }
0x12fe   :  { %3222 = vmatprep.subr.msk.mxu0 %vm1610_vm5, %v2305_v17 }
0x12ff   :  { %3223 = vmatpush3.xpose.msk.msra.mxu0 %vm1610_vm5, %v2305_v17  ;;  %v4438_v17 = vsel %vm2484_vm11, %v2485_v42, %v2479_v56 }
0x1301   :  { %v2303_v47 = vpop.permute.xlu1 %2302 }
0x1302   :  { %3224 = vmatprep.subr.msk.mxu0 %vm1610_vm5, %v2303_v47 }
0x1303   :  { %3225 = vmatpush3.xpose.msk.msra.mxu0 %vm1610_vm5, %v2303_v47  ;;  %v4441_v47 = vadd.s32 56, %v3830_v45 }
0x1305   :  { %v2301_v26 = vpop.permute.xlu1 %2300 }
0x1306   :  { %3226 = vmatprep.subr.msk.mxu0 %vm1610_vm5, %v2301_v26 }
0x1307   :  { %3227 = vmatpush3.xpose.msk.msra.mxu0 %vm1610_vm5, %v2301_v26 }
0x1309   :  { %v2299_v39 = vpop.permute.xlu1 %2298 }
0x130a   :  { %3228 = vmatprep.subr.msk.mxu0 %vm1610_vm5, %v2299_v39 }
0x130b   :  { %3229 = vmatpush3.xpose.msk.msra.mxu0 %vm1610_vm5, %v2299_v39 }
0x130d   :  { %v2297_v62 = vpop.permute.xlu1 %2296 }
0x130e   :  { %3230 = vmatprep.subr.msk.mxu0 %vm1610_vm5, %v2297_v62 }
0x130f   :  { %3231 = vmatpush3.xpose.msk.msra.mxu0 %vm1610_vm5, %v2297_v62 }
0x1312   :  { %3233 = vmatmul.mubr.msk.f32.vlgmr.msra.gmra.mxu0 %vm1610_vm5, %v4298_v58 }
0x1313   :  { %3235 = vmatprep.mubr.msk.f32.mxu0 %vm1610_vm5, %v4217_v27  ;;  %v1814_v27 = vadd.s32 8, %v3830_v45 }
0x1316   :  { %3236 = vmatmul.mubr.msk.f32.gmra.mxu0 %vm1610_vm5, %v4166_v11  ;;  %v4398_v11 = vmul.u32.u64.low 3435973837, %v1814_v27  ;;  %v4399_v0 = vmul.u32.u64.high 3435973837, %v1814_v27, %v4398_v11 }
0x1317   :  { %3238 = vmatprep.mubr.msk.f32.mxu0 %vm1610_vm5, %v4316_v55  ;;  %v1830_v55 = vmul.u32 10, %v1829_v23 }
0x1319   :  { %v1831_v34 = vsub.s32 %v3830_v45, %v1830_v55 }
0x131a   :  { %3239 = vmatmul.mubr.msk.f32.gmra.mxu0 %vm1610_vm5, %v1398_v31 }
0x131b   :  { %3241 = vmatprep.mubr.msk.f32.mxu0 %vm1610_vm5, %v4145_v50  ;;  %v1840_v50 = vshrl.u32 %v4399_v0, 3  ;;  %vm1933_vm12 = vcmp.ne.s32.totalorder %v1831_v34, 0  ;;  %vm1943_vm14 = vcmp.lt.s32.totalorder %v1831_v34, 0 }
0x131c   :  { %v4449_v11 = vmul.u32.u64.low 3435973837, %v4433_v40  ;;  %v4450_v0 = vmul.u32.u64.high 3435973837, %v4433_v40, %v4449_v11  ;;  %vm4462_vm3 = vmand %vm1943_vm14, %vm1933_vm12 }
0x131d   :  { %v1841_v60 = vmul.u32 10, %v1840_v50 }
0x131e   :  { %3242 = vmatmul.mubr.msk.f32.gmra.mxu0 %vm1610_vm5, %v4199_v30 }
0x131f   :  { %3244 = vmatprep.mubr.msk.f32.mxu0 %vm1610_vm5, %v4277_v8  ;;  %v1842_v35 = vsub.s32 %v1814_v27, %v1841_v60  ;;  %v4415_v63 = vmul.u32.u64.low 3435973837, %v1816_v59  ;;  %v4416_v8 = vmul.u32.u64.high 3435973837, %v1816_v59, %v4415_v63  ;;  %v1884_v27 = vshrl.u32 %v4430_v25, 3 }
0x1321   :  { %vm1934_vm6 = vcmp.ne.s32.totalorder %v1842_v35, 0  ;;  %vm1944_vm7 = vcmp.lt.s32.totalorder %v1842_v35, 0  ;;  %v1964_v48 = vadd.s32 10, %v1842_v35  ;;  %v1862_v7 = vshrl.u32 %v4416_v8, 3 }
0x1322   :  { %3245 = vmatmul.mubr.msk.f32.gmra.mxu0 %vm1610_vm5, %v4282_v19  ;;  %vm1954_vm8 = vmand %vm1944_vm7, %vm1934_vm6  ;;  %v4420_v22 = vmul.u32.u64.low 3435973837, %v1815_v5  ;;  %v4421_v19 = vmul.u32.u64.high 3435973837, %v1815_v5, %v4420_v22  ;;  %v1885_v60 = vmul.u32 10, %v1884_v27 }
0x1323   :  { %v4423_v24 = vsel %vm1954_vm8, %v1964_v48, %v1842_v35  ;;  %v1863_v15 = vmul.u32 10, %v1862_v7 }
0x1324   :  { %v1851_v20 = vshrl.u32 %v4421_v19, 3  ;;  %vm2488_vm13 = vcmp.eq.s32.totalorder %v4423_v24, %v4438_v17  ;;  %v1886_v54 = vsub.s32 %v1818_v6, %v1885_v60 }
0x1325   :  { %v1864_v39 = vsub.s32 %v1816_v59, %v1863_v15 }
0x1326   :  { %v1852_v62 = vmul.u32 10, %v1851_v20  ;;  %vm1938_vm10 = vcmp.ne.s32.totalorder %v1886_v54, 0  ;;  %vm1948_vm11 = vcmp.lt.s32.totalorder %v1886_v54, 0  ;;  %v1968_v61 = vadd.s32 10, %v1886_v54 }
0x1327   :  { %vm1936_vm15 = vcmp.ne.s32.totalorder %v1864_v39, 0  ;;  %vm1946_vm1 = vcmp.lt.s32.totalorder %v1864_v39, 0  ;;  %vm1958_vm12 = vmand %vm1948_vm11, %vm1938_vm10 }
0x1328   :  { %vm1956_vm2 = vmand %vm1946_vm1, %vm1936_vm15  ;;  %vm1984_vm1 = vcmp.eq.s32.totalorder %v4423_v24, %v4121_v49 }
0x1329   :  { %v4517_v7 = vsel %vm1984_vm1, 1.0, %v3610_v3 }
0x133b   :  { %v3134_v33 = vpop.f32.mrf.mxu0 }
0x133c   :  { %v1553_v28 = vadd.f32 %v3134_v33, %v2923_v4  ;;  %v1963_v33 = vadd.s32 10, %v1831_v34 }
0x133d   :  { %v1547_v30 = vpop.f32.mrf.mxu0 }
0x133e   :  { %v1548_v43 = vadd.f32 %v2923_v4, %v1547_v30  ;;  %v4482_v59 = vsel %vm4462_vm3, %v1963_v33, %v1831_v34 }
0x133f   :  { %v3137_v2 = vpop.f32.mrf.mxu0  ;;  %vm1983_vm14 = vcmp.eq.s32.totalorder %v4482_v59, %v4121_v49 }
0x1340   :  { %3543 = vtanh.f32 %v1548_v43  ;;  %v1563_v37 = vadd.f32 %v3137_v2, %v2923_v4  ;;  %v1853_v43 = vsub.s32 %v1815_v5, %v1852_v62 }
0x1341   :  { %3545 = vtanh.f32 %v1553_v28  ;;  %v1557_v29 = vpop.f32.mrf.mxu0  ;;  %v1966_v28 = vadd.s32 10, %v1864_v39 }
0x1342   :  { %v1558_v51 = vadd.f32 %v2923_v4, %v1557_v29  ;;  %vm1935_vm6 = vcmp.ne.s32.totalorder %v1853_v43, 0  ;;  %vm1945_vm7 = vcmp.lt.s32.totalorder %v1853_v43, 0  ;;  %v1965_v46 = vadd.s32 10, %v1853_v43 }
0x1343   :  { %v3140_v9 = vpop.f32.mrf.mxu0  ;;  %vm1955_vm8 = vmand %vm1945_vm7, %vm1935_vm6 }
0x1344   :  { %3547 = vtanh.f32 %v1558_v51  ;;  %v1573_v38 = vadd.f32 %v3140_v9, %v2923_v4  ;;  %v4466_v51 = vsel %vm1956_vm2, %v1966_v28, %v1864_v39 }
0x1345   :  { %3549 = vtanh.f32 %v1563_v37  ;;  %v1567_v44 = vpop.f32.mrf.mxu0  ;;  %v4456_v2 = vmul.u32.u64.low 3435973837, %v4441_v47  ;;  %v4457_v37 = vmul.u32.u64.high 3435973837, %v4441_v47, %v4456_v2  ;;  %vm2490_vm4 = vcmp.eq.s32.totalorder %v4466_v51, %v4438_v17 }
0x1346   :  { %v1568_v57 = vadd.f32 %v2923_v4, %v1567_v44  ;;  %3551 = vtanh.f32 %v1573_v38  ;;  %v1822_v38 = vadd.s32 72, %v3830_v45 }
0x1347   :  { %v3143_v41 = vpop.f32.mrf.mxu0  ;;  %v1906_v48 = vshrl.u32 %v4457_v37, 3 }
0x1348   :  { %3553 = vtanh.f32 %v1568_v57  ;;  %v1583_v18 = vadd.f32 %v3143_v41, %v2923_v4  ;;  %v1873_v57 = vshrl.u32 %v4450_v0, 3 }
0x1349   :  { %v1577_v36 = vpop.f32.mrf.mxu0  ;;  %v4477_v41 = vmul.u32.u64.low 3435973837, %v1822_v38  ;;  %v4478_v12 = vmul.u32.u64.high 3435973837, %v1822_v38, %v4477_v41  ;;  %v1907_v8 = vmul.u32 10, %v1906_v48 }
0x134a   :  { %3555 = vtanh.f32 %v1583_v18  ;;  %v1578_v16 = vadd.f32 %v2923_v4, %v1577_v36  ;;  %v4484_v18 = vsel %vm1955_vm8, %v1965_v46, %v1853_v43  ;;  %v4488_v36 = vadd.s32 64, %v3830_v45 }
0x134b   :  { %v3146_v21 = vpop.f32.mrf.mxu0  ;;  %vm2489_vm9 = vcmp.eq.s32.totalorder %v4484_v18, %v4438_v17  ;;  %v1874_v63 = vmul.u32 10, %v1873_v57  ;;  %v1908_v22 = vsub.s32 %v4441_v47, %v1907_v8 }
0x134c   :  { %3557 = vtanh.f32 %v1578_v16  ;;  %v1593_v53 = vadd.f32 %v3146_v21, %v2923_v4  ;;  %v4500_v16 = vsel %vm1983_vm14, 1.0, %v3610_v3  ;;  %v1928_v21 = vshrl.u32 %v4478_v12, 3 }
0x134d   :  { %v3544_v10 = vpop.eup %3543  ;;  %v1587_v58 = vpop.f32.mrf.mxu0  ;;  %2013 = vxpose.xlu0.b32.start [1/10] (short) (narrow) %v4500_v16, 16  ;;  %v1875_v23 = vsub.s32 %v4433_v40, %v1874_v63  ;;  %vm1940_vm6 = vcmp.ne.s32.totalorder %v1908_v22, 0  ;;  %vm1950_vm8 = vcmp.lt.s32.totalorder %v1908_v22, 0  ;;  %v1970_v55 = vadd.s32 10, %v1908_v22 }
0x134e   :  { %v3546_v31 = vpop.eup %3545  ;;  %v1588_v52 = vadd.f32 %v2923_v4, %v1587_v58  ;;  %3155 = vmatprep.mubr.msk.f32.mxu1 %vm1610_vm5, %v3544_v10  ;;  %v4453_v4 = vadd.s32 48, %v3830_v45  ;;  %v4497_v45 = vsel %vm1958_vm12, %v1968_v61, %v1886_v54  ;;  %v1929_v10 = vmul.u32 10, %v1928_v21  ;;  %vm1960_vm10 = vmand %vm1950_vm8, %vm1940_vm6 }
0x134f   :  { %3156 = vmatmul.mubr.msk.f32.vlgmr.msra.gmra.mxu1 %vm1610_vm5, %v3546_v31  ;;  %vm2492_vm15 = vcmp.eq.s32.totalorder %v4497_v45, %v4438_v17  ;;  %vm1937_vm2 = vcmp.ne.s32.totalorder %v1875_v23, 0  ;;  %vm1947_vm3 = vcmp.lt.s32.totalorder %v1875_v23, 0  ;;  %v1967_v56 = vadd.s32 10, %v1875_v23 }
0x1350   :  { %3559 = vtanh.f32 %v1588_v52  ;;  %v4469_v35 = vmul.u32.u64.low 3435973837, %v4453_v4  ;;  %v4470_v9 = vmul.u32.u64.high 3435973837, %v4453_v4, %v4469_v35  ;;  %vm1957_vm7 = vmand %vm1947_vm3, %vm1937_vm2  ;;  %v1930_v13 = vsub.s32 %v1822_v38, %v1929_v10 }
0x1351   :  { %v3548_v14 = vpop.eup %3547  ;;  %3561 = vtanh.f32 %v1593_v53  ;;  %v4512_v53 = vmul.u32.u64.low 3435973837, %v4488_v36  ;;  %v4513_v58 = vmul.u32.u64.high 3435973837, %v4488_v36, %v4512_v53  ;;  %v4520_v52 = vsel %vm1957_vm7, %v1967_v56, %v1875_v23  ;;  %2014 = vxpose.xlu0.b32.cont [2/10] (short) (narrow) %v4517_v7, 16 }
0x1352   :  { %v3550_v26 = vpop.eup %3549  ;;  %3158 = vmatprep.mubr.msk.f32.mxu1 %vm1610_vm5, %v3548_v14  ;;  %v1895_v5 = vshrl.u32 %v4470_v9, 3  ;;  %v4525_v25 = vsel %vm1960_vm10, %v1970_v55, %v1908_v22  ;;  %vm1942_vm2 = vcmp.ne.s32.totalorder %v1930_v13, 0  ;;  %vm1952_vm3 = vcmp.lt.s32.totalorder %v1930_v13, 0  ;;  %v2934_v9 = vld [vmem:[%s4799_s5 + $0x20] ss:$0 sm:$0xff]  ;;  %s3614_s5 = smov 118  }
0x1353   :  { %3159 = vmatmul.mubr.msk.f32.gmra.mxu1 %vm1610_vm5, %v3550_v26  ;;  %v3552_v50 = vpop.eup %3551  ;;  %vm2494_vm14 = vcmp.eq.s32.totalorder %v4525_v25, %v4438_v17  ;;  %vm1962_vm7 = vmand %vm1952_vm3, %vm1942_vm2  ;;  %v1972_v42 = vadd.s32 10, %v1930_v13  ;;  %vm1985_vm6 = vcmp.eq.s32.totalorder %v4484_v18, %v4121_v49  ;;  %v1917_v34 = vshrl.u32 %v4513_v58, 3 }
0x1354   :  { %v1896_v19 = vmul.u32 10, %v1895_v5  ;;  %v4535_v20 = vsel %vm1985_vm6, 1.0, %v3610_v3  ;;  %vm1986_vm8 = vcmp.eq.s32.totalorder %v4466_v51, %v4121_v49 }
0x1355   :  { %v3554_v30 = vpop.eup %3553  ;;  %v4541_v14 = vsel %vm1962_vm7, %v1972_v42, %v1930_v13  ;;  %2015 = vxpose.xlu0.b32.cont [3/10] (short) (narrow) %v4535_v20, 16  ;;  %v1918_v47 = vmul.u32 10, %v1917_v34  ;;  %v4547_v26 = vsel %vm1986_vm8, 1.0, %v3610_v3  ;;  %vm1988_vm7 = vcmp.eq.s32.totalorder %v4497_v45, %v4121_v49 }
0x1356   :  { %3161 = vmatprep.mubr.msk.f32.mxu1 %vm1610_vm5, %v3554_v30  ;;  %v1897_v31 = vsub.s32 %v4453_v4, %v1896_v19  ;;  %v4564_v0 = vsel %vm1988_vm7, 1.0, %v3610_v3  ;;  %vm2127_vm7 = vcmask 80896  }
0x1357   :  { %v3556_v44 = vpop.eup %3555  ;;  %3162 = vmatmul.mubr.msk.f32.gmra.mxu1 %vm1610_vm5, %v3552_v50  ;;  %v1919_v39 = vsub.s32 %v4488_v36, %v1918_v47 }
0x1358   :  { %vm1939_vm11 = vcmp.ne.s32.totalorder %v1897_v31, 0  ;;  %vm1949_vm12 = vcmp.lt.s32.totalorder %v1897_v31, 0  ;;  %v1969_v40 = vadd.s32 10, %v1897_v31 }
0x1359   :  { %v3558_v32 = vpop.eup %3557  ;;  %vm1959_vm1 = vmand %vm1949_vm12, %vm1939_vm11  ;;  %vm2496_vm11 = vcmp.eq.s32.totalorder %v4541_v14, %v4438_v17  ;;  %vm1987_vm12 = vcmp.eq.s32.totalorder %v4520_v52, %v4121_v49  ;;  %vm1951_vm2 = vcmp.lt.s32.totalorder %v1919_v39, 0  ;;  %v1971_v62 = vadd.s32 10, %v1919_v39  ;;  %2016 = vxpose.xlu0.b32.cont [4/10] (short) (narrow) %v4547_v26, 16 }
0x135a   :  { %3164 = vmatprep.mubr.msk.f32.mxu1 %vm1610_vm5, %v3558_v32  ;;  %v4532_v15 = vsel %vm1959_vm1, %v1969_v40, %v1897_v31  ;;  %vm1941_vm1 = vcmp.ne.s32.totalorder %v1919_v39, 0  ;;  %v4554_v27 = vsel %vm1987_vm12, 1.0, %v3610_v3  ;;  %vm1990_vm12 = vcmp.eq.s32.totalorder %v4525_v25, %v4121_v49  ;;  %v2777_v25 = vld [vmem:[%s4800_s6] sm:$0xff] }
0x135b   :  { %3165 = vmatmul.mubr.msk.f32.gmra.mxu1 %vm1610_vm5, %v3556_v44  ;;  %vm2493_vm10 = vcmp.eq.s32.totalorder %v4532_v15, %v4438_v17  ;;  %vm1961_vm3 = vmand %vm1951_vm2, %vm1941_vm1  ;;  %vm1989_vm8 = vcmp.eq.s32.totalorder %v4532_v15, %v4121_v49  ;;  %v4576_v50 = vsel %vm1990_vm12, 1.0, %v3610_v3  ;;  %vm1992_vm2 = vcmp.eq.s32.totalorder %v4541_v14, %v4121_v49  ;;  %v2778_v15 = vld [vmem:[%s4800_s6 + $0x8] sm:$0x3] }
0x135c   :  { %v4556_v11 = vsel %vm1961_vm3, %v1971_v62, %v1919_v39  ;;  %v4570_v4 = vsel %vm1989_vm8, 1.0, %v3610_v3  ;;  %v4588_v28 = vsel %vm1992_vm2, 1.0, %v3610_v3  ;;  %vm2045_vm3 = vcmask 654336  }
0x135d   :  { %v3560_v1 = vpop.eup %3559  ;;  %vm2495_vm6 = vcmp.eq.s32.totalorder %v4556_v11, %v4438_v17  ;;  %2017 = vxpose.xlu0.b32.cont [5/10] (short) (narrow) %v4554_v27, 16  ;;  %vm1991_vm1 = vcmp.eq.s32.totalorder %v4556_v11, %v4121_v49  ;;  %vm2487_vm8 = vcmp.eq.s32.totalorder %v4482_v59, %v4438_v17 }
0x135e   :  { %v3562_v6 = vpop.eup %3561  ;;  %3167 = vmatprep.mubr.msk.f32.mxu1 %vm1610_vm5, %v3560_v1  ;;  %v4582_v33 = vsel %vm1991_vm1, 1.0, %v3610_v3 }
0x135f   :  { %3168 = vmatmul.mubr.msk.f32.gmra.mxu1 %vm1610_vm5, %v3562_v6  ;;  %vm2491_vm5 = vcmp.eq.s32.totalorder %v4520_v52, %v4438_v17 }
0x1361   :  { %2018 = vxpose.xlu0.b32.cont [6/10] (short) (narrow) %v4564_v0, 16 }
0x1365   :  { %2019 = vxpose.xlu0.b32.cont [7/10] (short) (narrow) %v4570_v4, 16 }
0x1369   :  { %2020 = vxpose.xlu0.b32.cont [8/10] (short) (narrow) %v4576_v50, 16 }
0x136d   :  { %2021 = vxpose.xlu0.b32.cont [9/10] (short) (narrow) %v4582_v33, 16 }
0x1371   :  { %2022 = vxpose.xlu0.b32.end [10/10] (short) (narrow) %v4588_v28, 16 }
0x13c9   :  { %v2029_v60 = vpop.trf.xlu0 }
0x13ca   :  { %3190 = vmatprep.mubr.msk.f32.mxu1 %vm2045_vm3, %v2029_v60  ;;  %3302 = vmatprep.mubr.msk.f32.mxu0 %vm2045_vm3, %v2029_v60 }
0x13d2   :  { %v3234_v30 = vpop.f32.mrf.mxu0 }
0x13d3   :  { %v4594_v43 = vsel %vm2488_vm13, %v3234_v30, 0.0  ;;  %vm1756_vm13 = vcmask 162816  }
0x140f   :  { %v3157_v49 = vpop.f32.mrf.mxu1 }
0x1410   :  { %v1713_v46 = vadd.f32 %v3157_v49, %v2934_v9 }
0x1411   :  { %v1707_v2 = vpop.f32.mrf.mxu1 }
0x1412   :  { %v4601_v54 = vadd.f32 %v2934_v9, %v1707_v2  ;;  %v1758_v21 = vsel %vm1756_vm13, %v1713_v46, -inf }
0x1413   :  { %v3160_v37 = vpop.f32.mrf.mxu1 }
0x1414   :  { %v1723_v48 = vadd.f32 %v3160_v37, %v2934_v9  ;;  %v1757_v1 = vsel %vm1756_vm13, %v4601_v54, -inf }
0x1415   :  { %v1717_v29 = vpop.f32.mrf.mxu1 }
0x1416   :  { %v1718_v41 = vadd.f32 %v2934_v9, %v1717_v29  ;;  %v1760_v55 = vsel %vm1756_vm13, %v1723_v48, -inf }
0x1417   :  { %v3163_v3 = vpop.f32.mrf.mxu1 }
0x1418   :  { %v1733_v24 = vadd.f32 %v3163_v3, %v2934_v9  ;;  %v1759_v22 = vsel %vm1756_vm13, %v1718_v41, -inf }
0x1419   :  { %v1727_v35 = vpop.f32.mrf.mxu1 }
0x141a   :  { %v1728_v44 = vadd.f32 %v2934_v9, %v1727_v35  ;;  %v1763_v61 = vsel %vm1756_vm13, %v1733_v24, -inf }
0x141b   :  { %v3166_v38 = vpop.f32.mrf.mxu1  ;;  %v1764_v53 = vmax.f32 %v1758_v21, %v1763_v61 }
0x141c   :  { %v1743_v12 = vadd.f32 %v3166_v38, %v2934_v9  ;;  %v1761_v63 = vsel %vm1756_vm13, %v1728_v44, -inf }
0x141d   :  { %v1737_v57 = vpop.f32.mrf.mxu1  ;;  %v1762_v58 = vmax.f32 %v1757_v1, %v1761_v63 }
0x141e   :  { %v1738_v32 = vadd.f32 %v2934_v9, %v1737_v57  ;;  %v1767_v19 = vsel %vm1756_vm13, %v1743_v12, -inf }
0x141f   :  { %v3169_v36 = vpop.f32.mrf.mxu1  ;;  %v1768_v13 = vmax.f32 %v1760_v55, %v1767_v19 }
0x1420   :  { %v1765_v8 = vsel %vm1756_vm13, %v1738_v32, -inf  ;;  %v1753_v5 = vadd.f32 %v3169_v36, %v2934_v9 }
0x1421   :  { %v1747_v23 = vpop.f32.mrf.mxu1  ;;  %v1766_v56 = vmax.f32 %v1759_v22, %v1765_v8 }
0x1422   :  { %v1771_v6 = vsel %vm1756_vm13, %v1753_v5, -inf  ;;  %v1748_v10 = vadd.f32 %v2934_v9, %v1747_v23 }
0x1423   :  { %v1772_v40 = vmax.f32 %v1764_v53, %v1771_v6  ;;  %v1774_v34 = vmax.f32 %v1766_v56, %v1768_v13 }
0x1424   :  { %v1769_v31 = vsel %vm1756_vm13, %v1748_v10, -inf }
0x1425   :  { %v1770_v42 = vmax.f32 %v1762_v58, %v1769_v31  ;;  %v4649_v31 = vpop.trf.xlu0 }
0x1427   :  { %v1773_v47 = vmax.f32 %v1770_v42, %v1772_v40 }
0x1429   :  { %v1775_v39 = vmax.f32 %v1773_v47, %v1774_v34 }
0x142b   :  { %v1776_v62 = vrot.slane %v1775_v39, 4 }
0x142d   :  { %v1777_v30 = vmax.f32 %v1775_v39, %v1776_v62 }
0x142f   :  { %v1778_v60 = vrot.slane %v1777_v30, 2 }
0x1431   :  { %v1779_v49 = vmax.f32 %v1777_v30, %v1778_v60 }
0x1433   :  { %v1780_v2 = vrot.slane %v1779_v49, 1 }
0x1435   :  { %v1781_v37 = vmax.f32 %v1779_v49, %v1780_v2 }
0x1437   :  { %v1790_v29 = vsub.f32 %v1748_v10, %v1781_v37  ;;  %v1791_v3 = vsub.f32 %v1753_v5, %v1781_v37  ;;  %v1789_v35 = vsub.f32 %v1743_v12, %v1781_v37  ;;  %v1788_v57 = vsub.f32 %v1738_v32, %v1781_v37 }
0x1438   :  { %v1787_v61 = vsub.f32 %v1733_v24, %v1781_v37  ;;  %v1786_v8 = vsub.f32 %v1728_v44, %v1781_v37  ;;  %v1785_v1 = vsub.f32 %v1723_v48, %v1781_v37  ;;  %v1784_v22 = vsub.f32 %v1718_v41, %v1781_v37 }
0x1439   :  { %v1810_v9 = vmul.f32 1.442695, %v1791_v3  ;;  %v1808_v38 = vmul.f32 1.442695, %v1790_v29  ;;  %v1806_v36 = vmul.f32 1.442695, %v1789_v35  ;;  %v1783_v6 = vsub.f32 %v1713_v46, %v1781_v37 }
0x143a   :  { %v1804_v63 = vmul.f32 1.442695, %v1788_v57  ;;  %v1802_v21 = vmul.f32 1.442695, %v1787_v61  ;;  %v1800_v23 = vmul.f32 1.442695, %v1786_v8  ;;  %v1782_v5 = vsub.f32 %v4601_v54, %v1781_v37 }
0x143b   :  { %3563 = vpow2.f32 %v1810_v9  ;;  %v1798_v19 = vmul.f32 1.442695, %v1785_v1  ;;  %v1796_v12 = vmul.f32 1.442695, %v1784_v22  ;;  %v1794_v32 = vmul.f32 1.442695, %v1783_v6 }
0x143c   :  { %3565 = vpow2.f32 %v1808_v38  ;;  %v1792_v24 = vmul.f32 1.442695, %v1782_v5 }
0x143d   :  { %3567 = vpow2.f32 %v1806_v36 }
0x143e   :  { %3569 = vpow2.f32 %v1804_v63 }
0x143f   :  { %3571 = vpow2.f32 %v1802_v21 }
0x1440   :  { %3573 = vpow2.f32 %v1800_v23 }
0x1441   :  { %3575 = vpow2.f32 %v1798_v19 }
0x1442   :  { %3577 = vpow2.f32 %v1796_v12 }
0x1443   :  { %3579 = vpow2.f32 %v1794_v32 }
0x1444   :  { %3581 = vpow2.f32 %v1792_v24 }
0x1448   :  { %v4615_v10 = vpop.eup %3563 }
0x1449   :  { %3170 = vmatprep.subr.mxu1 %v4615_v10  ;;  %v4618_v44 = vpop.eup %3565 }
0x144a   :  { %3171 = vmatpush3.msra.mxu1 %v4615_v10  ;;  %v4622_v46 = vpop.eup %3567 }
0x144b   :  { %3172 = vmatprep.subr.mxu1 %v4618_v44  ;;  %v4626_v54 = vpop.eup %3569 }
0x144c   :  { %3173 = vmatpush3.msra.mxu1 %v4618_v44  ;;  %v4630_v41 = vpop.eup %3571 }
0x144d   :  { %3174 = vmatprep.subr.mxu1 %v4622_v46  ;;  %v4634_v48 = vpop.eup %3573 }
0x144e   :  { %3175 = vmatpush3.msra.mxu1 %v4622_v46  ;;  %v4638_v53 = vpop.eup %3575 }
0x144f   :  { %3176 = vmatprep.subr.mxu1 %v4626_v54  ;;  %v3578_v58 = vpop.eup %3577 }
0x1450   :  { %3177 = vmatpush3.msra.mxu1 %v4626_v54  ;;  %v4643_v56 = vpop.eup %3579 }
0x1451   :  { %3178 = vmatprep.subr.mxu1 %v4630_v41  ;;  %v4646_v55 = vpop.eup %3581 }
0x1452   :  { %3179 = vmatpush3.msra.mxu1 %v4630_v41 }
0x1453   :  { %3180 = vmatprep.subr.mxu1 %v4634_v48 }
0x1454   :  { %3181 = vmatpush3.msra.mxu1 %v4634_v48 }
0x1455   :  { %3182 = vmatprep.subr.mxu1 %v4638_v53 }
0x1456   :  { %3183 = vmatpush3.msra.mxu1 %v4638_v53 }
0x1457   :  { %3184 = vmatprep.subr.mxu1 %v3578_v58 }
0x1458   :  { %3185 = vmatpush3.msra.mxu1 %v3578_v58 }
0x1459   :  { %3186 = vmatprep.subr.mxu1 %v4643_v56 }
0x145a   :  { %3187 = vmatpush3.msra.mxu1 %v4643_v56 }
0x145b   :  { %3188 = vmatprep.subr.mxu1 %v4646_v55 }
0x145c   :  { %3189 = vmatpush3.msra.mxu1 %v4646_v55 }
0x145d   :  { %3191 = vmatmul.mubr.msk.f32.vlgmr.msra.gmra.mxu1 %vm2045_vm3, %v4649_v31 }
0x145e   :  { %3197 = vmatprep.mubr.msk.f32.mxu1 %vm2127_vm7, %v4500_v16  ;;  %v2422_v16 = vpop.f32.mrf.mxu0 }
0x1460   :  { %v3237_v6 = vpop.f32.mrf.mxu0 }
0x1462   :  { %v2432_v5 = vpop.f32.mrf.mxu0 }
0x151d   :  { %v3192_v13 = vpop.f32.mrf.mxu1 }
0x151e   :  { %3193 = vmatprep.subr.msk.mxu1 %vm444_vm0, %v3192_v13 }
0x151f   :  { %v2118_v40 = vpop.f32.mrf.mxu1  ;;  %3194 = vmatpush3.msk.msra.mxu1 %vm444_vm0, %v3192_v13 }
0x1520   :  { %3195 = vmatprep.subr.mxu1 %v2118_v40 }
0x1521   :  { %3196 = vmatpush3.msra.mxu1 %v2118_v40 }
0x1522   :  { %3198 = vmatmul.mubr.msk.f32.vlgmr.msra.gmra.mxu1 %vm2127_vm7, %v4517_v7  ;;  %v2497_v7 = vsel %vm2487_vm8, %v2422_v16, 0.0 }
0x1523   :  { %3200 = vmatprep.mubr.msk.f32.mxu1 %vm2127_vm7, %v4535_v20 }
0x1526   :  { %3201 = vmatmul.mubr.msk.f32.gmra.mxu1 %vm2127_vm7, %v4547_v26 }
0x1527   :  { %3203 = vmatprep.mubr.msk.f32.mxu1 %vm2127_vm7, %v4554_v27 }
0x152a   :  { %3204 = vmatmul.mubr.msk.f32.gmra.mxu1 %vm2127_vm7, %v4564_v0 }
0x152b   :  { %3206 = vmatprep.mubr.msk.f32.mxu1 %vm2127_vm7, %v4570_v4 }
0x152e   :  { %3207 = vmatmul.mubr.msk.f32.gmra.mxu1 %vm2127_vm7, %v4576_v50 }
0x152f   :  { %3209 = vmatprep.mubr.msk.f32.mxu1 %vm2127_vm7, %v4582_v33 }
0x1532   :  { %3210 = vmatmul.mubr.msk.f32.gmra.mxu1 %vm2127_vm7, %v4588_v28 }
0x1533   :  { %3267 = vmatprep.mubr.msk.f32.mxu1 %vm2045_vm3, %v2497_v7 }
0x15e2   :  { %v3199_v20 = vpop.f32.mrf.mxu1 }
0x15e4   :  { %v2227_v26 = vpop.f32.mrf.mxu1 }
0x15e6   :  { %v3202_v27 = vpop.f32.mrf.mxu1 }
0x15e8   :  { %v2237_v0 = vpop.f32.mrf.mxu1 }
0x15e9   :  { %3583 = vrcp.f32 %v2237_v0 }
0x15ea   :  { %v3205_v4 = vpop.f32.mrf.mxu1 }
0x15eb   :  { %3585 = vrcp.f32 %v3205_v4 }
0x15ec   :  { %v2247_v50 = vpop.f32.mrf.mxu1 }
0x15ee   :  { %v3208_v42 = vpop.f32.mrf.mxu1 }
0x15ef   :  { %3587 = vrcp.f32 %v3208_v42 }
0x15f0   :  { %v2257_v59 = vpop.f32.mrf.mxu1 }
0x15f1   :  { %3589 = vrcp.f32 %v2257_v59 }
0x15f2   :  { %v3211_v34 = vpop.f32.mrf.mxu1 }
0x15f3   :  { %3591 = vrcp.f32 %v3211_v34 }
0x15f4   :  { %v2267_v47 = vpop.f32.mrf.mxu1 }
0x15f5   :  { %3593 = vrcp.f32 %v2267_v47 }
0x15f6   :  { %v3584_v33 = vpop.eup %3583  ;;  %3595 = vrcp.f32 %v2247_v50 }
0x15f7   :  { %v4680_v39 = vmul.f32 %v3584_v33, %v3578_v58  ;;  %3597 = vrcp.f32 %v3202_v27 }
0x15f8   :  { %v3586_v28 = vpop.eup %3585  ;;  %3599 = vrcp.f32 %v3199_v20 }
0x15f9   :  { %2521 = vrot.lane.b32.xlu0 %v4680_v39, %s3614_s5  ;;  %v4685_v62 = vmul.f32 %v3586_v28, %v4630_v41  ;;  %3601 = vrcp.f32 %v2227_v26 }
0x15fb   :  { %2527 = vrot.lane.b32.xlu1 %v4685_v62, %s3614_s5 }
0x15fc   :  { %v3588_v30 = vpop.eup %3587 }
0x15fd   :  { %v4690_v60 = vmul.f32 %v3588_v30, %v4622_v46 }
0x15fe   :  { %v3590_v49 = vpop.eup %3589 }
0x15ff   :  { %2531 = vrot.lane.b32.xlu1 %v4690_v60, %s3614_s5  ;;  %v4695_v2 = vmul.f32 %v3590_v49, %v4626_v54 }
0x1600   :  { %v3592_v37 = vpop.eup %3591 }
0x1601   :  { %v4700_v29 = vmul.f32 %v3592_v37, %v4615_v10  ;;  %v3240_v10 = vpop.f32.mrf.mxu0 }
0x1602   :  { %v3594_v3 = vpop.eup %3593  ;;  %v2502_v18 = vsel %vm2492_vm15, %v3240_v10, 0.0 }
0x1603   :  { %2529 = vrot.lane.b32.xlu1 %v4695_v2, %s3614_s5  ;;  %v4705_v35 = vmul.f32 %v3594_v3, %v4618_v44  ;;  %v3596_v9 = vpop.eup %3595  ;;  %v2442_v44 = vpop.f32.mrf.mxu0 }
0x1604   :  { %v4710_v38 = vmul.f32 %v3596_v9, %v4634_v48  ;;  %v3598_v57 = vpop.eup %3597 }
0x1605   :  { %v4715_v36 = vmul.f32 %v3598_v57, %v4638_v53  ;;  %v3600_v61 = vpop.eup %3599  ;;  %v3243_v41 = vpop.f32.mrf.mxu0  ;;  %v2499_v53 = vsel %vm2489_vm9, %v2432_v5, 0.0 }
0x1606   :  { %v4720_v63 = vmul.f32 %v3600_v61, %v4643_v56  ;;  %v3602_v8 = vpop.eup %3601  ;;  %v2500_v56 = vsel %vm2490_vm4, %v3237_v6, 0.0  ;;  %v2504_v52 = vsel %vm2494_vm14, %v3243_v41, 0.0  ;;  %vm2868_vm4 = vcmask 7168  }
0x1607   :  { %2535 = vrot.lane.b32.xlu1 %v4700_v29, %s3614_s5  ;;  %v4725_v21 = vmul.f32 %v3602_v8, %v4646_v55  ;;  %v2452_v58 = vpop.f32.mrf.mxu0  ;;  %v2501_v55 = vsel %vm2491_vm5, %v2442_v44, 0.0 }
0x1609   :  { %v3246_v13 = vpop.f32.mrf.mxu0 }
0x160a   :  { %v2506_v45 = vsel %vm2496_vm11, %v3246_v13, 0.0 }
0x160b   :  { %2533 = vrot.lane.b32.xlu1 %v4705_v35, %s3614_s5  ;;  %v2462_v51 = vpop.f32.mrf.mxu0 }
0x160c   :  { %v2505_v40 = vsel %vm2495_vm6, %v2462_v51, 0.0 }
0x160f   :  { %2525 = vrot.lane.b32.xlu1 %v4710_v38, %s3614_s5 }
0x1613   :  { %2523 = vrot.lane.b32.xlu1 %v4715_v36, %s3614_s5 }
0x1617   :  { %2519 = vrot.lane.b32.xlu1 %v4720_v63, %s3614_s5 }
0x161b   :  { %2517 = vrot.lane.b32.xlu1 %v4725_v21, %s3614_s5 }
0x166b   :  { %v2522_v46 = vpop.permute.xlu0 %2521 }
0x166d   :  { %v2528_v1 = vpop.permute.xlu1 %2527 }
0x1671   :  { %v2532_v23 = vpop.permute.xlu1 %2531 }
0x1675   :  { %v2530_v22 = vpop.permute.xlu1 %2529 }
0x1679   :  { %v2536_v19 = vpop.permute.xlu1 %2535 }
0x167a   :  { %3247 = vmatprep.subr.mxu1 %v2536_v19 }
0x167b   :  { %3248 = vmatpush3.msra.mxu1 %v2536_v19 }
0x167d   :  { %v2534_v12 = vpop.permute.xlu1 %2533 }
0x167e   :  { %3249 = vmatprep.subr.mxu1 %v2534_v12 }
0x167f   :  { %3250 = vmatpush3.msra.mxu1 %v2534_v12 }
0x1680   :  { %3251 = vmatprep.subr.mxu1 %v2532_v23 }
0x1681   :  { %3252 = vmatpush3.msra.mxu1 %v2532_v23  ;;  %v2526_v32 = vpop.permute.xlu1 %2525 }
0x1682   :  { %3253 = vmatprep.subr.mxu1 %v2530_v22 }
0x1683   :  { %3254 = vmatpush3.msra.mxu1 %v2530_v22 }
0x1684   :  { %3255 = vmatprep.subr.mxu1 %v2528_v1 }
0x1685   :  { %3256 = vmatpush3.msra.mxu1 %v2528_v1  ;;  %v2524_v24 = vpop.permute.xlu1 %2523 }
0x1686   :  { %3257 = vmatprep.subr.mxu1 %v2526_v32 }
0x1687   :  { %3258 = vmatpush3.msra.mxu1 %v2526_v32 }
0x1688   :  { %3259 = vmatprep.subr.mxu1 %v2524_v24 }
0x1689   :  { %3260 = vmatpush3.msra.mxu1 %v2524_v24  ;;  %v2520_v54 = vpop.permute.xlu1 %2519 }
0x168a   :  { %3261 = vmatprep.subr.mxu1 %v2522_v46 }
0x168b   :  { %3262 = vmatpush3.msra.mxu1 %v2522_v46 }
0x168c   :  { %3263 = vmatprep.subr.mxu1 %v2520_v54 }
0x168d   :  { %3264 = vmatpush3.msra.mxu1 %v2520_v54  ;;  %v2518_v48 = vpop.permute.xlu1 %2517 }
0x168e   :  { %3265 = vmatprep.subr.mxu1 %v2518_v48 }
0x168f   :  { %3266 = vmatpush3.msra.mxu1 %v2518_v48 }
0x1690   :  { %3268 = vmatmul.mubr.msk.f32.vlgmr.msra.gmra.mxu1 %vm2045_vm3, %v4594_v43  ;;  %v2503_v43 = vsel %vm2493_vm10, %v2452_v58, 0.0  ;;  %3305 = vmatprep.subr.msk.mxu1 %vm444_vm0, %v2778_v15 }
0x1691   :  { %3270 = vmatprep.mubr.msk.f32.mxu1 %vm2045_vm3, %v2499_v53  ;;  %3306 = vmatpush3.msk.msra.mxu1 %vm444_vm0, %v2778_v15  ;;  %vm2870_vm0 = vcmask 1024  }
0x1692   :  { %3307 = vmatprep.subr.mxu1 %v2777_v25 }
0x1693   :  { %3308 = vmatpush3.msra.mxu1 %v2777_v25 }
0x1694   :  { %3271 = vmatmul.mubr.msk.f32.gmra.mxu1 %vm2045_vm3, %v2500_v56 }
0x1695   :  { %3273 = vmatprep.mubr.msk.f32.mxu1 %vm2045_vm3, %v2501_v55 }
0x1698   :  { %3274 = vmatmul.mubr.msk.f32.gmra.mxu1 %vm2045_vm3, %v2502_v18 }
0x1699   :  { %3276 = vmatprep.mubr.msk.f32.mxu1 %vm2045_vm3, %v2503_v43 }
0x169c   :  { %3277 = vmatmul.mubr.msk.f32.gmra.mxu1 %vm2045_vm3, %v2504_v52 }
0x169d   :  { %3279 = vmatprep.mubr.msk.f32.mxu1 %vm2045_vm3, %v2505_v40 }
0x16a0   :  { %3280 = vmatmul.mubr.msk.f32.gmra.mxu1 %vm2045_vm3, %v2506_v45 }
0x1750   :  { %v3269_v11 = vpop.f32.mrf.mxu1 }
0x1752   :  { %v2643_v16 = vpop.f32.mrf.mxu1 }
0x1754   :  { %v3272_v17 = vpop.f32.mrf.mxu1 }
0x1755   :  { %v2695_v28 = vmul.f32 %v3272_v17, %v4715_v36 }
0x1756   :  { %v2653_v14 = vpop.f32.mrf.mxu1 }
0x1757   :  { %v2694_v30 = vmul.f32 %v2653_v14, %v4680_v39  ;;  %v3000_v39 = vld [vmem:[%s4800_s6 + $0xa] ss:$0 sm:$0xff] }
0x1758   :  { %v3275_v7 = vpop.f32.mrf.mxu1 }
0x1759   :  { %v2697_v33 = vmul.f32 %v3275_v7, %v4685_v62  ;;  %v2692_v62 = vmul.f32 %v2643_v16, %v4725_v21 }
0x175a   :  { %v2663_v20 = vpop.f32.mrf.mxu1 }
0x175b   :  { %v2696_v47 = vmul.f32 %v2663_v20, %v4710_v38 }
0x175c   :  { %v3278_v26 = vpop.f32.mrf.mxu1 }
0x175d   :  { %v2699_v59 = vmul.f32 %v3278_v26, %v4690_v60  ;;  %v2693_v60 = vmul.f32 %v3269_v11, %v4720_v63 }
0x175e   :  { %v2673_v27 = vpop.f32.mrf.mxu1 }
0x175f   :  { %v2698_v34 = vmul.f32 %v2673_v27, %v4695_v2 }
0x1760   :  { %v3281_v0 = vpop.f32.mrf.mxu1 }
0x1761   :  { %v2701_v4 = vmul.f32 %v3281_v0, %v4700_v29 }
0x1762   :  { %v2683_v50 = vpop.f32.mrf.mxu1 }
0x1763   :  { %v2700_v42 = vmul.f32 %v2683_v50, %v4705_v35  ;;  %3282 = vmatprep.subr.mxu0 %v2701_v4 }
0x1764   :  { %3283 = vmatpush3.msra.mxu0 %v2701_v4 }
0x1765   :  { %3284 = vmatprep.subr.mxu0 %v2700_v42 }
0x1766   :  { %3285 = vmatpush3.msra.mxu0 %v2700_v42 }
0x1767   :  { %3286 = vmatprep.subr.mxu0 %v2699_v59 }
0x1768   :  { %3287 = vmatpush3.msra.mxu0 %v2699_v59 }
0x1769   :  { %3288 = vmatprep.subr.mxu0 %v2698_v34 }
0x176a   :  { %3289 = vmatpush3.msra.mxu0 %v2698_v34 }
0x176b   :  { %3290 = vmatprep.subr.mxu0 %v2697_v33 }
0x176c   :  { %3291 = vmatpush3.msra.mxu0 %v2697_v33 }
0x176d   :  { %3292 = vmatprep.subr.mxu0 %v2696_v47 }
0x176e   :  { %3293 = vmatpush3.msra.mxu0 %v2696_v47 }
0x176f   :  { %3294 = vmatprep.subr.mxu0 %v2695_v28 }
0x1770   :  { %3295 = vmatpush3.msra.mxu0 %v2695_v28 }
0x1771   :  { %3296 = vmatprep.subr.mxu0 %v2694_v30 }
0x1772   :  { %3297 = vmatpush3.msra.mxu0 %v2694_v30 }
0x1773   :  { %3298 = vmatprep.subr.mxu0 %v2693_v60 }
0x1774   :  { %3299 = vmatpush3.msra.mxu0 %v2693_v60 }
0x1775   :  { %3300 = vmatprep.subr.mxu0 %v2692_v62 }
0x1776   :  { %3301 = vmatpush3.msra.mxu0 %v2692_v62 }
0x1777   :  { %3303 = vmatmul.mubr.msk.f32.vlgmr.msra.gmra.mxu0 %vm2045_vm3, %v4649_v31 }
0x1837   :  { %v3304_v49 = vpop.f32.mrf.mxu0 }
0x1839   :  { %v2768_v2 = vpop.f32.mrf.mxu0 }
0x183a   :  { %3309 = vmatprep.mubr.msk.f32.mxu1 %vm2127_vm7, %v2768_v2 }
0x183b   :  { %3310 = vmatmul.mubr.msk.f32.vlgmr.msra.gmra.mxu1 %vm2127_vm7, %v3304_v49 }
0x18fb   :  { %v3311_v37 = vpop.f32.mrf.mxu1 }
0x18fc   :  { %v2865_v29 = vadd.f32 %v3311_v37, %v3000_v39 }
0x18fd   :  { %v2859_v3 = vpop.f32.mrf.mxu1 }
0x18fe   :  { %2871 = vst.msk [vmem:[%s4801_s7 + $0x8] sm:$0x3] %vm2870_vm0, %v2865_v29  ;;  %v2860_v31 = vadd.f32 %v3000_v39, %v2859_v3 }
0x1900   :  { %2869 = vst.msk [vmem:[%s4801_s7] sm:$0xff] %vm2868_vm4, %v2860_v31 }

</bundles_post_ra>
